<compile_context>
chip_gen: v7x
topology: tpu7x:2x2x1
jax: 0.10.0
libtpu: 0.0.40
codegen_flags: <defaults>
</compile_context>

<pallas_src>
import functools

import jax
import jax.numpy as jnp
import numpy as np
from jax.experimental import pallas as pl
from jax.experimental.pallas import tpu as pltpu

LANE = 128


def _round_up(v, m):
    return ((v + m - 1) // m) * m


def _pad2(a, rows, cols, value=0.0):
    return jnp.pad(a, ((0, rows - a.shape[0]), (0, cols - a.shape[1])),
                   constant_values=value)


def _pick_tile(n, max_tile=1024):
    """Node tile: big (>=512 when possible) to amortize per-step pipeline
    overhead, capped at 1024 (double-buffered A = 4 MiB, safe on 64 MiB v7x
    VMEM), and kept small enough that there are >= 2 row tiles so the
    'parallel' grid axis can use both v7x TensorCores."""
    n_up = _round_up(n, 256)
    tile = min(max_tile, n_up)
    while n_up // tile < 2 and tile > 256:
        tile //= 2
    return tile


def _make_diffpool_kernel(tile_n, h_pad, n_actual):
    """Kernel factory (tile size / pad split / true node count are static)."""

    def kernel(dinv_ref, a_ref, x_ref, wcat_ref, bcat_ref, wl_ref, bl_ref,
               out_ref, ax_acc):
        # Grid queries hoisted to the kernel top level; only captured values
        # are used inside pl.when bodies (required for interpret / fallback
        # lowering of program_id, and free on Mosaic).
        i = pl.program_id(0)
        k = pl.program_id(1)
        k_last = pl.num_programs(1) - 1
        row0 = i * tile_n

        @pl.when(k == 0)
        def _():
            ax_acc[...] = jnp.zeros_like(ax_acc)

        # Shared GCN message passing for this row tile: (A + I) @ (D^-1/2 X),
        # accumulated over the contraction (node) axis in f32.
        ax_acc[...] += jnp.dot(a_ref[...], x_ref[...],
                               preferred_element_type=jnp.float32)

        @pl.when(k == k_last)
        def _():
            # Left D^-1/2 row scaling completes A_norm @ X for this row tile.
            ax = (ax_acc[...] * dinv_ref[...]).astype(jnp.bfloat16)

            # Fused embed||assign GCN projection + bias + ReLU.
            zs = jnp.dot(ax, wcat_ref[...],
                         preferred_element_type=jnp.float32) + bcat_ref[...]
            zs = jnp.maximum(zs, 0.0)
            z = zs[:, :h_pad]              # (TILE, H_pad) lane-aligned slice
            s = zs[:, h_pad:]              # (TILE, A_pad)

            # Assignment linear + softmax over clusters.  Padded cluster
            # columns carry a -1e30 bias -> exp() == 0 -> softmax unaffected.
            logits = jnp.dot(s.astype(jnp.bfloat16), wl_ref[...],
                             preferred_element_type=jnp.float32) + bl_ref[...]
            logits = logits - jnp.max(logits, axis=-1, keepdims=True)
            p = jnp.exp(logits)
            s_soft = p / jnp.sum(p, axis=-1, keepdims=True)

            # Zero assignment rows of padded (non-existent) nodes so they do
            # not contribute to the pooled features.
            rows = row0 + jax.lax.broadcasted_iota(jnp.int32, (tile_n, 1), 0)
            s_soft = jnp.where(rows < n_actual, s_soft, 0.0)

            # Partial pooling for this row tile: s.T @ z (contract node axis).
            xp = jax.lax.dot_general(
                s_soft.astype(jnp.bfloat16), z.astype(jnp.bfloat16),
                (((0,), (0,)), ((), ())),
                preferred_element_type=jnp.float32)           # (C_pad, H_pad)
            out_ref[...] = xp.reshape((1,) + xp.shape)

    return kernel


def build_normalized_adjacency(num_nodes, edge_index):
    """Dense GCN normalization: D^-1/2 (A + I) D^-1/2 (PyG gcn_norm, weights=1).

    Used only by the pure-JAX f32 reference."""
    src = edge_index[0]
    dst = edge_index[1]
    adj = jnp.zeros((num_nodes, num_nodes), jnp.float32).at[dst, src].set(1.0)
    idx = jnp.arange(num_nodes)
    adj = adj.at[idx, idx].set(1.0)               # add_remaining_self_loops
    deg = jnp.sum(adj, axis=1)
    dinv = jnp.where(deg > 0, jax.lax.rsqrt(deg), 0.0)
    return dinv[:, None] * adj * dinv[None, :]


@functools.partial(jax.jit, static_argnames=("tile",))
def diffpool_forward(x, edge_index, params, *, tile=None):
    n, f_in = x.shape
    we, be = params["w_embed"], params["b_embed"]
    wa, ba = params["w_assign"], params["b_assign"]
    wl, bl = params["w_lin"], params["b_lin"]
    hidden, assign, clusters = we.shape[1], wa.shape[1], wl.shape[1]

    if tile is None:
        tile = _pick_tile(n)

    f_pad = _round_up(f_in, 8)            # block last dim == full array width
    h_pad = _round_up(hidden, LANE)
    a_pad = _round_up(assign, LANE)
    c_pad = _round_up(clusters, LANE)
    ha_pad = h_pad + a_pad
    n_pad = _round_up(n, tile)
    ni = n_pad // tile
    nk = n_pad // tile

    # ---- operand prep: one fused pass over the dense N^2 adjacency ---------
    # Stream RAW (A + I) in bf16 (entries exactly 0/1); fold D^-1/2 into a
    # right-scale of X here and a left row-scale inside the kernel epilogue.
    src, dst = edge_index[0], edge_index[1]
    a_raw = jnp.zeros((n_pad, n_pad), jnp.bfloat16).at[dst, src].set(1.0)
    idx = jnp.arange(n)
    a_raw = a_raw.at[idx, idx].set(1.0)           # add_remaining_self_loops
    deg = jnp.sum(a_raw, axis=1, dtype=jnp.float32)
    dinv = jnp.where(deg > 0, jax.lax.rsqrt(deg), 0.0)        # (n_pad,)

    x_p = (_pad2(x.astype(jnp.float32), n_pad, f_pad)
           * dinv[:, None]).astype(jnp.bfloat16)              # D^-1/2 X
    dinv_col = dinv[:, None].astype(jnp.float32)              # (n_pad, 1)

    # Fused embed||assign weight / bias.
    w_cat = jnp.concatenate([_pad2(we, f_pad, h_pad),
                             _pad2(wa, f_pad, a_pad)], axis=1).astype(jnp.bfloat16)
    b_cat = jnp.concatenate([_pad2(be, 1, h_pad),
                             _pad2(ba, 1, a_pad)], axis=1).astype(jnp.float32)

    wl_p = _pad2(wl, a_pad, c_pad).astype(jnp.bfloat16)
    bl_p = _pad2(bl, 1, c_pad, value=-1e30).astype(jnp.float32)

    kernel = _make_diffpool_kernel(tile, h_pad, n)

    flops = (2 * n_pad * n_pad * f_pad + 2 * n_pad * f_pad * ha_pad
             + 2 * n_pad * a_pad * c_pad + 2 * n_pad * c_pad * h_pad)
    bytes_accessed = ((a_raw.size + x_p.size + w_cat.size + wl_p.size) * 2
                      + (b_cat.size + bl_p.size + dinv_col.size) * 4
                      + ni * c_pad * h_pad * 4)

    partials = pl.pallas_call(
        kernel,
        out_shape=jax.ShapeDtypeStruct((ni, c_pad, h_pad), jnp.float32),
        grid=(ni, nk),
        in_specs=[
            pl.BlockSpec((tile, 1), lambda i, k: (i, 0)),        # D^-1/2 rows
            pl.BlockSpec((tile, tile), lambda i, k: (i, k)),     # A + I (bf16)
            pl.BlockSpec((tile, f_pad), lambda i, k: (k, 0)),    # D^-1/2 X
            pl.BlockSpec((f_pad, ha_pad), lambda i, k: (0, 0)),  # W_e || W_a
            pl.BlockSpec((1, ha_pad), lambda i, k: (0, 0)),      # b_e || b_a
            pl.BlockSpec((a_pad, c_pad), lambda i, k: (0, 0)),   # W_lin
            pl.BlockSpec((1, c_pad), lambda i, k: (0, 0)),       # b_lin
        ],
        out_specs=pl.BlockSpec((1, c_pad, h_pad), lambda i, k: (i, 0, 0)),
        scratch_shapes=[pltpu.VMEM((tile, f_pad), jnp.float32)],
        compiler_params=pltpu.CompilerParams(
            dimension_semantics=("parallel", "arbitrary"),
            # tile<=1024 -> ~4.5 MiB/step; 32 MiB is safe on 64 MiB v7x and
            # lifts v5e's 16 MiB scoped default so big tiles actually pipeline.
            vmem_limit_bytes=32 * 1024 * 1024,
        ),
        cost_estimate=pl.CostEstimate(
            flops=flops,
            transcendentals=n_pad * c_pad,
            bytes_accessed=bytes_accessed,
        ),
    )(dinv_col, a_raw, x_p, w_cat, b_cat, wl_p, bl_p)

    # Reduce row-tile partials (one per "parallel" i block) and strip padding.
    return jnp.sum(partials, axis=0)[:clusters, :hidden]


def diffpool_reference(x, edge_index, params):
    """Pure-JAX f32 reference mirroring the PyTorch module (adj_pool=False)."""
    a_norm = build_normalized_adjacency(x.shape[0], edge_index)
    ax = a_norm @ x
    z = jax.nn.relu(ax @ params["w_embed"] + params["b_embed"])
    s = jax.nn.relu(ax @ params["w_assign"] + params["b_assign"])
    s = jax.nn.softmax(s @ params["w_lin"] + params["b_lin"], axis=-1)
    return s.T @ z


if __name__ == "__main__":
    # Synthetic graph: ring edges in both directions + long-range chords.
    # N=512 -> auto tile=256 -> grid (2, 2): exercises the ax accumulator,
    # the partial-xpool reduction, and the node-row masking path.
    N = 512
    in_channels = 8
    hidden_channels = 32
    assign_channels = 16
    num_clusters = 4

    key = jax.random.PRNGKey(0)
    kx, k1, k2, k3, k4, k5, k6 = jax.random.split(key, 7)

    x = jax.random.normal(kx, (N, in_channels), dtype=jnp.float32)

    ring_src = np.arange(N)
    ring_dst = (np.arange(N) + 1) % N
    chord_src = np.arange(0, N, 16)
    chord_dst = (chord_src + N // 2) % N
    src = np.concatenate([ring_src, ring_dst, chord_src])
    dst = np.concatenate([ring_dst, ring_src, chord_dst])
    edge_index = jnp.asarray(np.stack([src, dst]), dtype=jnp.int32)   # (2, E)

    # Deterministic parameter init (shapes implied by the module __init__).
    # Biases kept 2D (1, dim) for TPU-friendly layout; broadcasting matches.
    params = {
        "w_embed":  0.1 * jax.random.normal(k1, (in_channels, hidden_channels), jnp.float32),
        "b_embed":  0.1 * jax.random.normal(k2, (1, hidden_channels), jnp.float32),
        "w_assign": 0.1 * jax.random.normal(k3, (in_channels, assign_channels), jnp.float32),
        "b_assign": 0.1 * jax.random.normal(k4, (1, assign_channels), jnp.float32),
        "w_lin":    0.1 * jax.random.normal(k5, (assign_channels, num_clusters), jnp.float32),
        "b_lin":    0.1 * jax.random.normal(k6, (1, num_clusters), jnp.float32),
    }

    out = jax.block_until_ready(diffpool_forward(x, edge_index, params))
    ref = jax.block_until_ready(diffpool_reference(x, edge_index, params))

    assert out.shape == (num_clusters, hidden_channels)
    # bf16 inputs with f32 accumulation: loosened tolerance vs the f32 reference.
    np.testing.assert_allclose(np.asarray(out), np.asarray(ref),
                               rtol=3e-2, atol=3e-2)

    print("KERNEL_OK")
</pallas_src>

<mosaic_0001>
module attributes {stable_mosaic.version = 11 : i64} {
  func.func @kernel(%arg0: i32, %arg1: i32, %arg2: memref<256x1xf32, #tpu.memory_space<vmem>>, %arg3: memref<256x256xbf16, #tpu.memory_space<vmem>>, %arg4: memref<256x8xbf16, #tpu.memory_space<vmem>>, %arg5: memref<8x256xbf16, #tpu.memory_space<vmem>>, %arg6: memref<1x256xf32, #tpu.memory_space<vmem>>, %arg7: memref<128x128xbf16, #tpu.memory_space<vmem>>, %arg8: memref<1x128xf32, #tpu.memory_space<vmem>>, %arg9: memref<1x128x128xf32, #tpu.memory_space<vmem>>, %arg10: memref<256x8xf32, #tpu.memory_space<vmem>>) attributes {dimension_semantics = [#tpu.dimension_semantics<parallel>, #tpu.dimension_semantics<arbitrary>], iteration_bounds = array<i64: 2, 2>, scalar_prefetch = 0 : i64, scratch_operands = 1 : i64, tpu.core_type = #tpu.core_type<tc>, window_params = [{transform_indices = @transform_0, window_bounds = array<i64: 256, 1>}, {transform_indices = @transform_1, window_bounds = array<i64: 256, 256>}, {transform_indices = @transform_2, window_bounds = array<i64: 256, 8>}, {pipeline_mode = #tpu.pipeline_mode<synchronous>, transform_indices = @transform_3, window_bounds = array<i64: 8, 256>}, {pipeline_mode = #tpu.pipeline_mode<synchronous>, transform_indices = @transform_4, window_bounds = array<i64: 1, 256>}, {pipeline_mode = #tpu.pipeline_mode<synchronous>, transform_indices = @transform_5, window_bounds = array<i64: 128, 128>}, {pipeline_mode = #tpu.pipeline_mode<synchronous>, transform_indices = @transform_6, window_bounds = array<i64: 1, 128>}, {transform_indices = @transform_7, window_bounds = array<i64: 1, 128, 128>}]} {
    %c256_i32 = arith.constant 256 : i32
    %0 = arith.muli %arg0, %c256_i32 : i32
    %c0_i32 = arith.constant 0 : i32
    %1 = arith.cmpi eq, %arg1, %c0_i32 : i32
    %2 = arith.extui %1 : i1 to i32
    %c0_i32_0 = arith.constant 0 : i32
    %3 = arith.cmpi ne, %2, %c0_i32_0 : i32
    scf.if %3 {
      %cst_9 = arith.constant 0.000000e+00 : f32
      %13 = vector.broadcast %cst_9 : f32 to vector<256x8xf32>
      %c0_10 = arith.constant 0 : index
      %c0_11 = arith.constant 0 : index
      %14 = vector.load %arg10[%c0_10, %c0_11] : memref<256x8xf32, #tpu.memory_space<vmem>>, vector<256x8xf32>
      tpu.vector_store %arg10[%c0_10, %c0_11], %13 {strides = array<i32>} : memref<256x8xf32, #tpu.memory_space<vmem>>, vector<256x8xf32>,
    } else {
    }
    %c0 = arith.constant 0 : index
    %c0_1 = arith.constant 0 : index
    %4 = vector.load %arg10[%c0, %c0_1] : memref<256x8xf32, #tpu.memory_space<vmem>>, vector<256x8xf32>
    %c0_2 = arith.constant 0 : index
    %c0_3 = arith.constant 0 : index
    %5 = vector.load %arg3[%c0_2, %c0_3] : memref<256x256xbf16, #tpu.memory_space<vmem>>, vector<256x256xbf16>
    %c0_4 = arith.constant 0 : index
    %c0_5 = arith.constant 0 : index
    %6 = vector.load %arg4[%c0_4, %c0_5] : memref<256x8xbf16, #tpu.memory_space<vmem>>, vector<256x8xbf16>
    %cst = arith.constant dense<0.000000e+00> : vector<256x8xf32>
    %7 = tpu.matmul %5, %6, %cst {dimension_numbers = #tpu.dot_dimension_numbers<[1], [0], [0], [1], [0, 0, 1, 1], [], []>} : vector<256x256xbf16>, vector<256x8xbf16>, vector<256x8xf32> -> vector<256x8xf32>
    %8 = arith.addf %4, %7 : vector<256x8xf32>
    %c0_6 = arith.constant 0 : index
    %c0_7 = arith.constant 0 : index
    %9 = vector.load %arg10[%c0_6, %c0_7] : memref<256x8xf32, #tpu.memory_space<vmem>>, vector<256x8xf32>
    tpu.vector_store %arg10[%c0_6, %c0_7], %8 {strides = array<i32>} : memref<256x8xf32, #tpu.memory_space<vmem>>, vector<256x8xf32>,
    %c1_i32 = arith.constant 1 : i32
    %10 = arith.cmpi eq, %arg1, %c1_i32 : i32
    %11 = arith.extui %10 : i1 to i32
    %c0_i32_8 = arith.constant 0 : i32
    %12 = arith.cmpi ne, %11, %c0_i32_8 : i32
    scf.if %12 {
      %c0_9 = arith.constant 0 : index
      %c0_10 = arith.constant 0 : index
      %13 = vector.load %arg10[%c0_9, %c0_10] : memref<256x8xf32, #tpu.memory_space<vmem>>, vector<256x8xf32>
      %c0_11 = arith.constant 0 : index
      %c0_12 = arith.constant 0 : index
      %14 = vector.load %arg2[%c0_11, %c0_12] : memref<256x1xf32, #tpu.memory_space<vmem>>, vector<256x1xf32>
      %15 = vector.broadcast %14 : vector<256x1xf32> to vector<256x8xf32>
      %16 = arith.mulf %13, %15 : vector<256x8xf32>
      %17 = arith.truncf %16 : vector<256x8xf32> to vector<256x8xbf16>
      %c0_13 = arith.constant 0 : index
      %c0_14 = arith.constant 0 : index
      %18 = vector.load %arg5[%c0_13, %c0_14] : memref<8x256xbf16, #tpu.memory_space<vmem>>, vector<8x256xbf16>
      %cst_15 = arith.constant dense<0.000000e+00> : vector<256x256xf32>
      %19 = tpu.matmul %17, %18, %cst_15 {dimension_numbers = #tpu.dot_dimension_numbers<[1], [0], [0], [1], [0, 0, 1, 1], [], []>} : vector<256x8xbf16>, vector<8x256xbf16>, vector<256x256xf32> -> vector<256x256xf32>
      %c0_16 = arith.constant 0 : index
      %c0_17 = arith.constant 0 : index
      %20 = vector.load %arg6[%c0_16, %c0_17] : memref<1x256xf32, #tpu.memory_space<vmem>>, vector<1x256xf32>
      %21 = vector.broadcast %20 : vector<1x256xf32> to vector<256x256xf32>
      %22 = arith.addf %19, %21 : vector<256x256xf32>
      %cst_18 = arith.constant 0.000000e+00 : f32
      %23 = vector.broadcast %cst_18 : f32 to vector<256x256xf32>
      %24 = arith.maximumf %22, %23 : vector<256x256xf32>
      %25 = vector.extract_strided_slice %24 {offsets = [0, 0], sizes = [256, 128], strides = [1, 1]} : vector<256x256xf32> to vector<256x128xf32>
      %26 = vector.extract_strided_slice %24 {offsets = [0, 128], sizes = [256, 128], strides = [1, 1]} : vector<256x256xf32> to vector<256x128xf32>
      %27 = arith.truncf %26 : vector<256x128xf32> to vector<256x128xbf16>
      %c0_19 = arith.constant 0 : index
      %c0_20 = arith.constant 0 : index
      %28 = vector.load %arg7[%c0_19, %c0_20] : memref<128x128xbf16, #tpu.memory_space<vmem>>, vector<128x128xbf16>
      %cst_21 = arith.constant dense<0.000000e+00> : vector<256x128xf32>
      %29 = tpu.matmul %27, %28, %cst_21 {dimension_numbers = #tpu.dot_dimension_numbers<[1], [0], [0], [1], [0, 0, 1, 1], [], []>} : vector<256x128xbf16>, vector<128x128xbf16>, vector<256x128xf32> -> vector<256x128xf32>
      %c0_22 = arith.constant 0 : index
      %c0_23 = arith.constant 0 : index
      %30 = vector.load %arg8[%c0_22, %c0_23] : memref<1x128xf32, #tpu.memory_space<vmem>>, vector<1x128xf32>
      %31 = vector.broadcast %30 : vector<1x128xf32> to vector<256x128xf32>
      %32 = arith.addf %29, %31 : vector<256x128xf32>
      %cst_24 = arith.constant dense<0xFF800000> : vector<256xf32>
      %33 = vector.multi_reduction <maximumf>, %32, %cst_24 [1] : vector<256x128xf32> to vector<256xf32>
      %34 = vector.shape_cast %33 : vector<256xf32> to vector<256x1xf32>
      %35 = vector.broadcast %34 : vector<256x1xf32> to vector<256x128xf32>
      %36 = arith.subf %32, %35 : vector<256x128xf32>
      %37 = math.exp %36 : vector<256x128xf32>
      %cst_25 = arith.constant dense<0.000000e+00> : vector<256xf32>
      %38 = vector.multi_reduction <add>, %37, %cst_25 [1] : vector<256x128xf32> to vector<256xf32>
      %39 = vector.shape_cast %38 : vector<256xf32> to vector<256x1xf32>
      %40 = vector.broadcast %39 : vector<256x1xf32> to vector<256x128xf32>
      %41 = arith.divf %37, %40 : vector<256x128xf32>
      %42 = tpu.iota {dimensions = array<i32: 0>} : vector<256x1xi32>
      %43 = vector.broadcast %0 : i32 to vector<256x1xi32>
      %44 = arith.addi %43, %42 : vector<256x1xi32>
      %c512_i32 = arith.constant 512 : i32
      %45 = vector.broadcast %c512_i32 : i32 to vector<256x1xi32>
      %46 = arith.cmpi slt, %44, %45 : vector<256x1xi32>
      %cst_26 = arith.constant 0.000000e+00 : f32
      %47 = vector.shape_cast %46 : vector<256x1xi1> to vector<256x1xi1>
      %48 = vector.broadcast %47 : vector<256x1xi1> to vector<256x128xi1>
      %49 = vector.broadcast %cst_26 : f32 to vector<256x128xf32>
      %50 = arith.select %48, %41, %49 : vector<256x128xi1>, vector<256x128xf32>
      %51 = arith.truncf %50 : vector<256x128xf32> to vector<256x128xbf16>
      %52 = arith.truncf %25 : vector<256x128xf32> to vector<256x128xbf16>
      %cst_27 = arith.constant dense<0.000000e+00> : vector<128x128xf32>
      %53 = tpu.matmul %51, %52, %cst_27 {dimension_numbers = #tpu.dot_dimension_numbers<[0], [0], [1], [1], [0, 1, 1, 1], [], []>} : vector<256x128xbf16>, vector<256x128xbf16>, vector<128x128xf32> -> vector<128x128xf32>
      %54 = vector.shape_cast %53 : vector<128x128xf32> to vector<1x128x128xf32>
      %c0_28 = arith.constant 0 : index
      %c0_29 = arith.constant 0 : index
      %c0_30 = arith.constant 0 : index
      %55 = vector.load %arg9[%c0_28, %c0_29, %c0_30] : memref<1x128x128xf32, #tpu.memory_space<vmem>>, vector<1x128x128xf32>
      tpu.vector_store %arg9[%c0_28, %c0_29, %c0_30], %54 {strides = array<i32>} : memref<1x128x128xf32, #tpu.memory_space<vmem>>, vector<1x128x128xf32>,
    } else {
    }
    return
  }
  func.func @transform_0(%arg0: i32, %arg1: i32) -> (i32, i32) {
    %c0_i32 = arith.constant 0 : i32
    %c0_i32_0 = arith.constant 0 : i32
    return %arg0, %c0_i32 : i32, i32
  }
  func.func @transform_1(%arg0: i32, %arg1: i32) -> (i32, i32) {
    %c0_i32 = arith.constant 0 : i32
    return %arg0, %arg1 : i32, i32
  }
  func.func @transform_2(%arg0: i32, %arg1: i32) -> (i32, i32) {
    %c0_i32 = arith.constant 0 : i32
    %c0_i32_0 = arith.constant 0 : i32
    return %arg1, %c0_i32 : i32, i32
  }
  func.func @transform_3(%arg0: i32, %arg1: i32) -> (i32, i32) {
    %c0_i32 = arith.constant 0 : i32
    %c0_i32_0 = arith.constant 0 : i32
    %c0_i32_1 = arith.constant 0 : i32
    return %c0_i32, %c0_i32_0 : i32, i32
  }
  func.func @transform_4(%arg0: i32, %arg1: i32) -> (i32, i32) {
    %c0_i32 = arith.constant 0 : i32
    %c0_i32_0 = arith.constant 0 : i32
    %c0_i32_1 = arith.constant 0 : i32
    return %c0_i32, %c0_i32_0 : i32, i32
  }
  func.func @transform_5(%arg0: i32, %arg1: i32) -> (i32, i32) {
    %c0_i32 = arith.constant 0 : i32
    %c0_i32_0 = arith.constant 0 : i32
    %c0_i32_1 = arith.constant 0 : i32
    return %c0_i32, %c0_i32_0 : i32, i32
  }
  func.func @transform_6(%arg0: i32, %arg1: i32) -> (i32, i32) {
    %c0_i32 = arith.constant 0 : i32
    %c0_i32_0 = arith.constant 0 : i32
    %c0_i32_1 = arith.constant 0 : i32
    return %c0_i32, %c0_i32_0 : i32, i32
  }
  func.func @transform_7(%arg0: i32, %arg1: i32) -> (i32, i32, i32) {
    %c0_i32 = arith.constant 0 : i32
    %c0_i32_0 = arith.constant 0 : i32
    %c0_i32_1 = arith.constant 0 : i32
    return %arg0, %c0_i32, %c0_i32_0 : i32, i32, i32
  }
}

</mosaic_0001>

<bundles_post_ra>
// kernel: diffpool_forward.1
= control target key start
LH: loop header
LB: loop body
LE: loop exit
PB: predicated region body
PF: predicated region fallthrough
CT: control target
= control target key end

     0   :  { %s4327_s0 = inlined_call_operand.vmem [shape: f32[512,1], index: 0, kind: input, shape index: {}]   ;;  %s4328_s1 = inlined_call_operand.vmem [shape: bf16[512,512], index: 1, kind: input, shape index: {}]   ;;  %s4329_s2 = inlined_call_operand.vmem [shape: bf16[512,8], index: 2, kind: input, shape index: {}]   ;;  %s4330_s3 = inlined_call_operand.vmem [shape: bf16[8,256], index: 3, kind: input, shape index: {}]   ;;  %s4331_s4 = inlined_call_operand.vmem [shape: f32[1,256], index: 4, kind: input, shape index: {}]   ;;  %s4332_s5 = inlined_call_operand.vmem [shape: bf16[128,128], index: 5, kind: input, shape index: {}]   ;;  %s4333_s6 = inlined_call_operand.vmem [shape: f32[1,128], index: 6, kind: input, shape index: {}]   ;;  %s4334_s7 = inlined_call_operand.vmem [shape: f32[2,128,128], index: 7, kind: output, shape index: {}]  }
   0x1   :  { %4337 = sst [smem:[#allocation6_spill]] %s4328_s1 }
   0x2   :  { %s3470_s24 = smov 0   ;;  %s3472_s25 = smov 0  }
   0x3   :  { %s3474_s26 = smov 0   ;;  %s3476_s27 = smov 0  }
   0x4   :  { %s3478_s28 = smov 0   ;;  %s3480_s29 = smov 0  }
   0x5   :  { %s3482_s30 = smov 0  }
   0x6 LB: > { %s26_s8 = sadd.s32 1, %s3418_s28  ;;  %s29_s9 = sadd.s32 1, %s3422_s29  ;;  %s3426_s30 = sphi %s3482_s30, %s17_s30   ;;  %s3422_s29 = sphi %s3480_s29, %s4348_s29   ;;  %s3418_s28 = sphi %s3478_s28, %s4347_s28   ;;  %s3414_s27 = sphi %s3476_s27, %s4346_s27   ;;  %s3410_s26 = sphi %s3474_s26, %s4345_s26   ;;  %s3406_s25 = sphi %s3472_s25, %s4344_s25   ;;  %s3402_s24 = sphi %s3470_s24, %s4343_s24  }
   0x7   : > { %p27_p0 = scmp.ge.s32.totalorder %s26_s8, 2  ;;  %p71_p1 = scmp.ne.s32.totalorder %s3406_s25, %s3402_s24 }
   0x8   : > { %p72_p2 = scmp.eq.s32.totalorder %s3426_s30, 0  ;;  %s64_s13 = sadd.s32 1, %s3406_s25 }
   0x9   : > { %s4350_s8 = smov (%p27_p0, %s26_s8), 0  ;;  %s4352_s9 = smov (!%p27_p0, %s29_s9), %s3422_s29 }
   0xa   : > { %4338 = sst [smem:[#allocation4_spill]] %s4350_s8  ;;  %p73_p3 = por %p72_p2, %p71_p1 }
   0xb   : > { %p31_p4 = scmp.ge.s32.totalorder %s4352_s9, 2  ;;  %s60_s10 = ssub.s32 %s3418_s28, %s4350_s8 }
   0xc   : > { %p2733_p6 = scmp.ge.s32.totalorder %s3426_s30, 4 }
   0xd   : > { %s4354_s9 = smov (%p31_p4, %s4352_s9), 0 }
   0xe   : > { %4339 = sst [smem:[#allocation5_spill]] %s4354_s9  ;;  %s59_s11 = ssub.s32 %s3422_s29, %s4354_s9 }
   0xf   : > { %s61_s12 = sor.u32 %s60_s10, %s59_s11  ;;  %245 = sbr.rel (%p2733_p6) target bundleno = 48 (0x30), region = 32 }
  0x10   : > { %p62_p5 = scmp.eq.s32.totalorder %s61_s12, 0 }
  0x12   : > { %s3521_s14 = scalar_select %p62_p5, %s3406_s25, %s64_s13  }
  0x16   : > { %257 = sbr.rel (!%p73_p3) target bundleno = 48 (0x30), region = 40  ;;  %s259_s15 = sand.u32 (%p73_p3), 1, %s3406_s25  }
  0x17   : > { %s2736_s16 = sshll.u32 (%p73_p3), %s3418_s28, 1  ;;  %s2734_s17 = sshll.u32 (%p73_p3), %s259_s15, 8 }
  0x18   : > { %s2828_s18 = sshll.u32 (%p73_p3), %s3422_s29, 7  ;;  %s4340_s1 = sld [smem:[#allocation6_spill]] (%p73_p3) }
  0x19   : > { %s265_s19 = sadd.s32 (%p73_p3), %s2828_s18, %s2736_s16  ;;  %s3535_s10 = scalar_lea.vmem (%p73_p3), [#allocation3], %s2734_s17 }
  0x1a   : > { %s2738_s20 = sshll.u32 (%p73_p3), %s265_s19, 2 }
  0x1e   : > { %s3530_s23 = scalar_lea.vmem %s4340_s1, %s2738_s20 }
  0x1f   : > { %v357_v0 = vld [vmem:[%s3530_s23] sm:$0xff]  ;;  %v359_v1 = vld [vmem:[%s3530_s23 + $0x10] sm:$0xff] }
  0x20   : > { %v361_v2 = vld [vmem:[%s3530_s23 + $0x20] sm:$0xff]  ;;  %358 = vst [vmem:[%s3535_s10] sm:$0xff] %v357_v0  ;;  %360 = vst [vmem:[%s3535_s10 + $0x8] sm:$0xff] %v359_v1  ;;  %v363_v3 = vld [vmem:[%s3530_s23 + $0x30] sm:$0xff] }
  0x21   : > { %362 = vst [vmem:[%s3535_s10 + $0x10] sm:$0xff] %v361_v2  ;;  %v365_v4 = vld [vmem:[%s3530_s23 + $0x40] sm:$0xff]  ;;  %v367_v5 = vld [vmem:[%s3530_s23 + $0x50] sm:$0xff]  ;;  %364 = vst [vmem:[%s3535_s10 + $0x18] sm:$0xff] %v363_v3 }
  0x22   : > { %366 = vst [vmem:[%s3535_s10 + $0x20] sm:$0xff] %v365_v4  ;;  %368 = vst [vmem:[%s3535_s10 + $0x28] sm:$0xff] %v367_v5  ;;  %v369_v6 = vld [vmem:[%s3530_s23 + $0x60] sm:$0xff]  ;;  %v371_v7 = vld [vmem:[%s3530_s23 + $0x70] sm:$0xff] }
  0x23   : > { %v373_v8 = vld [vmem:[%s3530_s23 + $0x80] sm:$0xff]  ;;  %370 = vst [vmem:[%s3535_s10 + $0x30] sm:$0xff] %v369_v6  ;;  %372 = vst [vmem:[%s3535_s10 + $0x38] sm:$0xff] %v371_v7  ;;  %v375_v9 = vld [vmem:[%s3530_s23 + $0x90] sm:$0xff] }
  0x24   : > { %374 = vst [vmem:[%s3535_s10 + $0x40] sm:$0xff] %v373_v8  ;;  %v377_v10 = vld [vmem:[%s3530_s23 + $0xa0] sm:$0xff]  ;;  %v379_v11 = vld [vmem:[%s3530_s23 + $0xb0] sm:$0xff]  ;;  %376 = vst [vmem:[%s3535_s10 + $0x48] sm:$0xff] %v375_v9 }
  0x25   : > { %378 = vst [vmem:[%s3535_s10 + $0x50] sm:$0xff] %v377_v10  ;;  %380 = vst [vmem:[%s3535_s10 + $0x58] sm:$0xff] %v379_v11  ;;  %v381_v12 = vld [vmem:[%s3530_s23 + $0xc0] sm:$0xff]  ;;  %v383_v13 = vld [vmem:[%s3530_s23 + $0xd0] sm:$0xff] }
  0x26   : > { %v385_v14 = vld [vmem:[%s3530_s23 + $0xe0] sm:$0xff]  ;;  %382 = vst [vmem:[%s3535_s10 + $0x60] sm:$0xff] %v381_v12  ;;  %384 = vst [vmem:[%s3535_s10 + $0x68] sm:$0xff] %v383_v13  ;;  %v387_v15 = vld [vmem:[%s3530_s23 + $0xf0] sm:$0xff] }
  0x27   : > { %386 = vst [vmem:[%s3535_s10 + $0x70] sm:$0xff] %v385_v14  ;;  %v389_v16 = vld [vmem:[%s3530_s23 + $0x100] sm:$0xff]  ;;  %v391_v17 = vld [vmem:[%s3530_s23 + $0x110] sm:$0xff]  ;;  %388 = vst [vmem:[%s3535_s10 + $0x78] sm:$0xff] %v387_v15 }
  0x28   : > { %390 = vst [vmem:[%s3535_s10 + $0x80] sm:$0xff] %v389_v16  ;;  %392 = vst [vmem:[%s3535_s10 + $0x88] sm:$0xff] %v391_v17  ;;  %v393_v18 = vld [vmem:[%s3530_s23 + $0x120] sm:$0xff]  ;;  %v395_v19 = vld [vmem:[%s3530_s23 + $0x130] sm:$0xff] }
  0x29   : > { %v397_v20 = vld [vmem:[%s3530_s23 + $0x140] sm:$0xff]  ;;  %394 = vst [vmem:[%s3535_s10 + $0x90] sm:$0xff] %v393_v18  ;;  %396 = vst [vmem:[%s3535_s10 + $0x98] sm:$0xff] %v395_v19  ;;  %v399_v21 = vld [vmem:[%s3530_s23 + $0x150] sm:$0xff] }
  0x2a   : > { %398 = vst [vmem:[%s3535_s10 + $0xa0] sm:$0xff] %v397_v20  ;;  %v401_v22 = vld [vmem:[%s3530_s23 + $0x160] sm:$0xff]  ;;  %v403_v23 = vld [vmem:[%s3530_s23 + $0x170] sm:$0xff]  ;;  %400 = vst [vmem:[%s3535_s10 + $0xa8] sm:$0xff] %v399_v21 }
  0x2b   : > { %402 = vst [vmem:[%s3535_s10 + $0xb0] sm:$0xff] %v401_v22  ;;  %404 = vst [vmem:[%s3535_s10 + $0xb8] sm:$0xff] %v403_v23  ;;  %v405_v24 = vld [vmem:[%s3530_s23 + $0x180] sm:$0xff]  ;;  %v407_v25 = vld [vmem:[%s3530_s23 + $0x190] sm:$0xff] }
  0x2c   : > { %v409_v26 = vld [vmem:[%s3530_s23 + $0x1a0] sm:$0xff]  ;;  %406 = vst [vmem:[%s3535_s10 + $0xc0] sm:$0xff] %v405_v24  ;;  %408 = vst [vmem:[%s3535_s10 + $0xc8] sm:$0xff] %v407_v25  ;;  %v411_v27 = vld [vmem:[%s3530_s23 + $0x1b0] sm:$0xff] }
  0x2d   : > { %410 = vst [vmem:[%s3535_s10 + $0xd0] sm:$0xff] %v409_v26  ;;  %v413_v28 = vld [vmem:[%s3530_s23 + $0x1c0] sm:$0xff]  ;;  %v415_v29 = vld [vmem:[%s3530_s23 + $0x1d0] sm:$0xff]  ;;  %412 = vst [vmem:[%s3535_s10 + $0xd8] sm:$0xff] %v411_v27 }
  0x2e   : > { %414 = vst [vmem:[%s3535_s10 + $0xe0] sm:$0xff] %v413_v28  ;;  %416 = vst [vmem:[%s3535_s10 + $0xe8] sm:$0xff] %v415_v29  ;;  %v417_v30 = vld [vmem:[%s3530_s23 + $0x1e0] sm:$0xff]  ;;  %v419_v31 = vld [vmem:[%s3530_s23 + $0x1f0] sm:$0xff] }
  0x2f   : > { %418 = vst [vmem:[%s3535_s10 + $0xf0] sm:$0xff] %v417_v30  ;;  %420 = vst [vmem:[%s3535_s10 + $0xf8] sm:$0xff] %v419_v31 }
  0x30 PF: > { %p2739_p7 = scmp.ge.s32.totalorder %s3426_s30, 1  ;;  %p434_p8 = scmp.lt.s32.totalorder %s3426_s30, 5 }
  0x32   : > { %p435_p9 = pnand %p2739_p7, %p434_p8 }
  0x33   : > { %s441_s11 = sand.u32 (!%p435_p9), 1, %s3402_s24   ;;  %s2741_s12 = sshll.u32 (!%p435_p9), %s3414_s27, 5 }
  0x34   : > { %438 = sbr.rel (%p435_p9) target bundleno = 1730 (0x6c2), region = 82  ;;  %s2740_s13 = sshll.u32 (!%p435_p9), %s441_s11, 8 }
  0x35   : > { %p483_p10 = scmp.lt.s32.totalorder (!%p435_p9), %s2741_s12, 63  ;;  %s2743_s15 = sshll.u32 (!%p435_p9), %s3410_s26, 5 }
  0x36   : > { %p491_p11 = scmp.lt.s32.totalorder (!%p435_p9), %s2743_s15, 63  ;;  %p496_p12 = scmp.lt.s32.totalorder (!%p435_p9), %s3414_s27, 1 }
  0x37   : > { %s2747_s17 = sshll.u32 (!%p435_p9), %s3414_s27, 8  ;;  %p2748_p13 = scmp.ne.s32.totalorder (!%p435_p9), %s3410_s26, 0 }
  0x3b   : > { %s4356_s12 = smov (!%p483_p10, %s2741_s12), 63  ;;  %s4358_s15 = smov (!%p491_p11, %s2743_s15), 63 }
  0x3c   : > { %s2742_s16 = sshll.u32 %s4356_s12, 3  ;;  %s2744_s22 = sshll.u32 %s4358_s15, 2  ;;  %vm507_vm0 = vcmask (!%p2748_p13), 64512   ;;  %v3428_v32 = vmov (!%p2748_p13), 0.0  }
  0x3d   : > { %s3608_s20 = scalar_lea.vmem %s4327_s0, %s2742_s16  ;;  %s3614_s24 = scalar_lea.vmem %s4329_s2, %s2744_s22  ;;  %508 = vst.msk [vmem:[#allocation2] sm:$0xff] (!%p2748_p13), %vm507_vm0, %v3428_v32  ;;  %509 = vst.msk [vmem:[#allocation2 + $0x8] sm:$0xff] (!%p2748_p13), %vm507_vm0, %v3428_v32 }
  0x3e   : > { %s497_s21 = scalar_select %p496_p12, %s3414_s27, 1 }
  0x3f   : > { %s3621_s12 = scalar_lea.vmem [#allocation3], %s2740_s13  ;;  %506 = sbr.rel (%p2748_p13) target bundleno = 78 (0x4e), region = 90  ;;  %510 = vst.msk [vmem:[#allocation2 + $0x10] sm:$0xff] (!%p2748_p13), %vm507_vm0, %v3428_v32  ;;  %511 = vst.msk [vmem:[#allocation2 + $0x18] sm:$0xff] (!%p2748_p13), %vm507_vm0, %v3428_v32 }
  0x40   : > { %s2829_s11 = sshll.u32 %s497_s21, 7  ;;  %512 = vst.msk [vmem:[#allocation2 + $0x20] sm:$0xff] (!%p2748_p13), %vm507_vm0, %v3428_v32  ;;  %513 = vst.msk [vmem:[#allocation2 + $0x28] sm:$0xff] (!%p2748_p13), %vm507_vm0, %v3428_v32 }
  0x41   : > { %s3619_s8 = scalar_lea.vmem %s4334_s7, %s2829_s11  ;;  %514 = vst.msk [vmem:[#allocation2 + $0x30] sm:$0xff] (!%p2748_p13), %vm507_vm0, %v3428_v32  ;;  %515 = vst.msk [vmem:[#allocation2 + $0x38] sm:$0xff] (!%p2748_p13), %vm507_vm0, %v3428_v32 }
  0x42   : > { %516 = vst.msk [vmem:[#allocation2 + $0x40] sm:$0xff] (!%p2748_p13), %vm507_vm0, %v3428_v32  ;;  %517 = vst.msk [vmem:[#allocation2 + $0x48] sm:$0xff] (!%p2748_p13), %vm507_vm0, %v3428_v32 }
  0x43   : > { %518 = vst.msk [vmem:[#allocation2 + $0x50] sm:$0xff] (!%p2748_p13), %vm507_vm0, %v3428_v32  ;;  %519 = vst.msk [vmem:[#allocation2 + $0x58] sm:$0xff] (!%p2748_p13), %vm507_vm0, %v3428_v32 }
  0x44   : > { %520 = vst.msk [vmem:[#allocation2 + $0x60] sm:$0xff] (!%p2748_p13), %vm507_vm0, %v3428_v32  ;;  %521 = vst.msk [vmem:[#allocation2 + $0x68] sm:$0xff] (!%p2748_p13), %vm507_vm0, %v3428_v32 }
  0x45   : > { %522 = vst.msk [vmem:[#allocation2 + $0x70] sm:$0xff] (!%p2748_p13), %vm507_vm0, %v3428_v32  ;;  %523 = vst.msk [vmem:[#allocation2 + $0x78] sm:$0xff] (!%p2748_p13), %vm507_vm0, %v3428_v32 }
  0x46   : > { %524 = vst.msk [vmem:[#allocation2 + $0x80] sm:$0xff] %vm507_vm0, %v3428_v32  ;;  %525 = vst.msk [vmem:[#allocation2 + $0x88] sm:$0xff] %vm507_vm0, %v3428_v32 }
  0x47   : > { %526 = vst.msk [vmem:[#allocation2 + $0x90] sm:$0xff] %vm507_vm0, %v3428_v32  ;;  %527 = vst.msk [vmem:[#allocation2 + $0x98] sm:$0xff] %vm507_vm0, %v3428_v32 }
  0x48   : > { %528 = vst.msk [vmem:[#allocation2 + $0xa0] sm:$0xff] %vm507_vm0, %v3428_v32  ;;  %529 = vst.msk [vmem:[#allocation2 + $0xa8] sm:$0xff] %vm507_vm0, %v3428_v32 }
  0x49   : > { %530 = vst.msk [vmem:[#allocation2 + $0xb0] sm:$0xff] %vm507_vm0, %v3428_v32  ;;  %531 = vst.msk [vmem:[#allocation2 + $0xb8] sm:$0xff] %vm507_vm0, %v3428_v32 }
  0x4a   : > { %532 = vst.msk [vmem:[#allocation2 + $0xc0] sm:$0xff] %vm507_vm0, %v3428_v32  ;;  %533 = vst.msk [vmem:[#allocation2 + $0xc8] sm:$0xff] %vm507_vm0, %v3428_v32 }
  0x4b   : > { %534 = vst.msk [vmem:[#allocation2 + $0xd0] sm:$0xff] %vm507_vm0, %v3428_v32  ;;  %535 = vst.msk [vmem:[#allocation2 + $0xd8] sm:$0xff] %vm507_vm0, %v3428_v32 }
  0x4c   : > { %536 = vst.msk [vmem:[#allocation2 + $0xe0] sm:$0xff] %vm507_vm0, %v3428_v32  ;;  %537 = vst.msk [vmem:[#allocation2 + $0xe8] sm:$0xff] %vm507_vm0, %v3428_v32 }
  0x4d   : > { %538 = vst.msk [vmem:[#allocation2 + $0xf0] sm:$0xff] %vm507_vm0, %v3428_v32  ;;  %539 = vst.msk [vmem:[#allocation2 + $0xf8] sm:$0xff] %vm507_vm0, %v3428_v32 }
  0x4e PF: > { %v3168_v33 = vld [vmem:[%s3614_s24 + $0x40] sm:$0xff]   ;;  %v3170_v35 = vld [vmem:[%s3614_s24 + $0x48] sm:$0xff]   ;;  %v3172_v37 = vld [vmem:[%s3614_s24 + $0x50] sm:$0xff]   ;;  %vm1085_vm1 = vcmask 64512   ;;  %p2797_p0 = scmp.ne.s32.totalorder %s3410_s26, 1 }
  0x4f   : > { %v3169_v34 = vld [vmem:[%s3614_s24] sm:$0xff]   ;;  %2830 = vmatprep.subr.bf16.mxu0 %v3168_v33  ;;  %3078 = vmatprep.subr.bf16.mxu1 %v3168_v33  ;;  %v3171_v36 = vld [vmem:[%s3614_s24 + $0x8] sm:$0xff]   ;;  %v3173_v38 = vld [vmem:[%s3614_s24 + $0x10] sm:$0xff]   ;;  %vm1460_vm2 = vcmask (!%p2797_p0), 1043456  }
  0x50   : > { %2831 = vmatpush3.bf16.msra.mxu0 %v3169_v34  ;;  %3086 = vmatpush3.bf16.msra.mxu1 %v3169_v34  ;;  %v3174_v39 = vld [vmem:[%s3614_s24 + $0x58] sm:$0xff]   ;;  %v3176_v41 = vld [vmem:[%s3614_s24 + $0x60] sm:$0xff]   ;;  %v3178_v43 = vld [vmem:[%s3614_s24 + $0x68] sm:$0xff]  }
  0x51   : > { %2832 = vmatprep.subr.bf16.mxu0 %v3170_v35  ;;  %3079 = vmatprep.subr.bf16.mxu1 %v3170_v35  ;;  %v3175_v40 = vld [vmem:[%s3614_s24 + $0x18] sm:$0xff]   ;;  %v3177_v42 = vld [vmem:[%s3614_s24 + $0x20] sm:$0xff]   ;;  %v3179_v46 = vld [vmem:[%s3614_s24 + $0x28] sm:$0xff]  }
  0x52   : > { %v3186_v44 = vld [vmem:[%s3621_s12 + $0x4] ss:$8 sps:$4 sm:$0xff]   ;;  %v3180_v47 = vld [vmem:[%s3614_s24 + $0x70] sm:$0xff]   ;;  %v3182_v49 = vld [vmem:[%s3614_s24 + $0x78] sm:$0xff]  }
  0x53   : > { %v3189_v45 = vld [vmem:[%s3621_s12 + $0x84] ss:$8 sps:$4 sm:$0xff]   ;;  %924 = vmatprep.mubr.bf16.mxu0 %v3186_v44  ;;  %v3181_v48 = vld [vmem:[%s3614_s24 + $0x30] sm:$0xff]   ;;  %v3183_v50 = vld [vmem:[%s3614_s24 + $0x38] sm:$0xff]  }
  0x54   : > { %2833 = vmatpush3.bf16.msra.mxu0 %v3171_v36  ;;  %3087 = vmatpush3.bf16.msra.mxu1 %v3171_v36  ;;  %v3184_v51 = vld [vmem:[%s3621_s12] ss:$8 sps:$4 sm:$0xff]   ;;  %v3190_v53 = vld [vmem:[%s3621_s12 + $0x14] ss:$8 sps:$4 sm:$0xff]   ;;  %v3194_v55 = vld [vmem:[%s3621_s12 + $0x10] ss:$8 sps:$4 sm:$0xff]  }
  0x55   : > { %2834 = vmatprep.subr.bf16.mxu0 %v3172_v37  ;;  %3080 = vmatprep.subr.bf16.mxu1 %v3172_v37  ;;  %v3187_v52 = vld [vmem:[%s3621_s12 + $0x80] ss:$8 sps:$4 sm:$0xff]   ;;  %v3192_v54 = vld [vmem:[%s3621_s12 + $0x94] ss:$8 sps:$4 sm:$0xff]   ;;  %v3195_v56 = vld [vmem:[%s3621_s12 + $0x90] ss:$8 sps:$4 sm:$0xff]  }
  0x56   : > { %988 = vmatprep.mubr.bf16.mxu1 %v3189_v45  ;;  %v3196_v57 = vld [vmem:[%s3621_s12 + $0x24] ss:$8 sps:$4 sm:$0xff]   ;;  %v3200_v59 = vld [vmem:[%s3621_s12 + $0x20] ss:$8 sps:$4 sm:$0xff]   ;;  %v3202_v61 = vld [vmem:[%s3621_s12 + $0x34] ss:$8 sps:$4 sm:$0xff]  }
  0x57   : > { %v3198_v58 = vld [vmem:[%s3621_s12 + $0xa4] ss:$8 sps:$4 sm:$0xff]   ;;  %v3201_v60 = vld [vmem:[%s3621_s12 + $0xa0] ss:$8 sps:$4 sm:$0xff]   ;;  %v3204_v62 = vld [vmem:[%s3621_s12 + $0xb4] ss:$8 sps:$4 sm:$0xff]  }
  0x58   : > { %2835 = vmatpush3.bf16.msra.mxu0 %v3173_v38  ;;  %3088 = vmatpush3.bf16.msra.mxu1 %v3173_v38  ;;  %v3206_v63 = vld [vmem:[%s3621_s12 + $0x30] ss:$8 sps:$4 sm:$0xff]   ;;  %v3208_v1 = vld [vmem:[%s3621_s12 + $0x44] ss:$8 sps:$4 sm:$0xff]   ;;  %v3212_v3 = vld [vmem:[%s3621_s12 + $0x40] ss:$8 sps:$4 sm:$0xff]  }
  0x59   : > { %2836 = vmatprep.subr.bf16.mxu0 %v3174_v39  ;;  %3081 = vmatprep.subr.bf16.mxu1 %v3174_v39  ;;  %v3207_v0 = vld [vmem:[%s3621_s12 + $0xb0] ss:$8 sps:$4 sm:$0xff]   ;;  %v3210_v2 = vld [vmem:[%s3621_s12 + $0xc4] ss:$8 sps:$4 sm:$0xff]   ;;  %v3213_v4 = vld [vmem:[%s3621_s12 + $0xc0] ss:$8 sps:$4 sm:$0xff]  }
  0x5a   : > { %v3214_v5 = vld [vmem:[%s3621_s12 + $0x54] ss:$8 sps:$4 sm:$0xff]   ;;  %v3218_v7 = vld [vmem:[%s3621_s12 + $0x50] ss:$8 sps:$4 sm:$0xff]   ;;  %v3220_v9 = vld [vmem:[%s3621_s12 + $0x64] ss:$8 sps:$4 sm:$0xff]  }
  0x5b   : > { %v3216_v6 = vld [vmem:[%s3621_s12 + $0xd4] ss:$8 sps:$4 sm:$0xff]   ;;  %v3219_v8 = vld [vmem:[%s3621_s12 + $0xd0] ss:$8 sps:$4 sm:$0xff]   ;;  %v3222_v10 = vld [vmem:[%s3621_s12 + $0xe4] ss:$8 sps:$4 sm:$0xff]  }
  0x5c   : > { %2837 = vmatpush3.bf16.msra.mxu0 %v3175_v40  ;;  %3089 = vmatpush3.bf16.msra.mxu1 %v3175_v40  ;;  %v3224_v11 = vld [vmem:[%s3621_s12 + $0x60] ss:$8 sps:$4 sm:$0xff]   ;;  %v3226_v13 = vld [vmem:[%s3621_s12 + $0x74] ss:$8 sps:$4 sm:$0xff]   ;;  %v3230_v15 = vld [vmem:[%s3621_s12 + $0x70] ss:$8 sps:$4 sm:$0xff]  }
  0x5d   : > { %2838 = vmatprep.subr.bf16.mxu0 %v3176_v41  ;;  %3082 = vmatprep.subr.bf16.mxu1 %v3176_v41  ;;  %v3225_v12 = vld [vmem:[%s3621_s12 + $0xe0] ss:$8 sps:$4 sm:$0xff]   ;;  %v3228_v14 = vld [vmem:[%s3621_s12 + $0xf4] ss:$8 sps:$4 sm:$0xff]   ;;  %v3231_v16 = vld [vmem:[%s3621_s12 + $0xf0] ss:$8 sps:$4 sm:$0xff]  }
  0x5e   : > { %v540_v19 = vld [vmem:[#allocation2] sm:$0xff]  ;;  %v541_v27 = vld [vmem:[#allocation2 + $0x8] sm:$0xff]  ;;  %v542_v39 = vld [vmem:[#allocation2 + $0x10] sm:$0xff] }
  0x5f   : > { %v556_v21 = vld [vmem:[#allocation2 + $0x80] sm:$0xff]  ;;  %v557_v29 = vld [vmem:[#allocation2 + $0x88] sm:$0xff]  ;;  %v558_v41 = vld [vmem:[#allocation2 + $0x90] sm:$0xff] }
  0x60   : > { %2839 = vmatpush3.bf16.msra.mxu0 %v3177_v42  ;;  %3090 = vmatpush3.bf16.msra.mxu1 %v3177_v42 }
  0x61   : > { %2840 = vmatprep.subr.bf16.mxu0 %v3178_v43  ;;  %3083 = vmatprep.subr.bf16.mxu1 %v3178_v43 }
  0x64   : > { %2841 = vmatpush3.bf16.msra.mxu0 %v3179_v46  ;;  %3091 = vmatpush3.bf16.msra.mxu1 %v3179_v46 }
  0x65   : > { %2842 = vmatprep.subr.bf16.mxu0 %v3180_v47  ;;  %3084 = vmatprep.subr.bf16.mxu1 %v3180_v47  ;;  %v543_v47 = vld [vmem:[#allocation2 + $0x18] sm:$0xff] }
  0x68   : > { %2843 = vmatpush3.bf16.msra.mxu0 %v3181_v48  ;;  %3092 = vmatpush3.bf16.msra.mxu1 %v3181_v48 }
  0x69   : > { %2844 = vmatprep.subr.bf16.mxu0 %v3182_v49  ;;  %3085 = vmatprep.subr.bf16.mxu1 %v3182_v49  ;;  %v559_v49 = vld [vmem:[#allocation2 + $0x98] sm:$0xff] }
  0x6c   : > { %2845 = vmatpush3.bf16.msra.mxu0 %v3183_v50  ;;  %3093 = vmatpush3.bf16.msra.mxu1 %v3183_v50 }
  0x6f   : > { %925 = vmatmul.mubr.bf16.vlgmr.msra.gmra.mrb[0].mxu0 %v3184_v51  ;;  %989 = vmatmul.mubr.bf16.vlgmr.msra.gmra.mrb[0].mxu1 %v3187_v52 }
  0x70   : > { %932 = vmatprep.mubr.bf16.mxu0 %v3190_v53  ;;  %996 = vmatprep.mubr.bf16.mxu1 %v3192_v54 }
  0x77   : > { %933 = vmatmul.mubr.bf16.gmra.mrb[4].mxu0 %v3194_v55  ;;  %997 = vmatmul.mubr.bf16.gmra.mrb[4].mxu1 %v3195_v56 }
  0x78   : > { %940 = vmatprep.mubr.bf16.mxu0 %v3196_v57  ;;  %1004 = vmatprep.mubr.bf16.mxu1 %v3198_v58 }
  0x7f   : > { %941 = vmatmul.mubr.bf16.gmra.mrb[8].mxu0 %v3200_v59  ;;  %1005 = vmatmul.mubr.bf16.gmra.mrb[8].mxu1 %v3201_v60  ;;  %v544_v59 = vld [vmem:[#allocation2 + $0x20] sm:$0xff] }
  0x80   : > { %948 = vmatprep.mubr.bf16.mxu0 %v3202_v61  ;;  %1012 = vmatprep.mubr.bf16.mxu1 %v3204_v62  ;;  %v560_v61 = vld [vmem:[#allocation2 + $0xa0] sm:$0xff] }
  0x87   : > { %949 = vmatmul.mubr.bf16.gmra.mrb[12].mxu0 %v3206_v63  ;;  %1013 = vmatmul.mubr.bf16.gmra.mrb[12].mxu1 %v3207_v0 }
  0x88   : > { %956 = vmatprep.mubr.bf16.mxu0 %v3208_v1  ;;  %1020 = vmatprep.mubr.bf16.mxu1 %v3210_v2 }
  0x8f   : > { %957 = vmatmul.mubr.bf16.gmra.mrb[16].mxu0 %v3212_v3  ;;  %1021 = vmatmul.mubr.bf16.gmra.mrb[16].mxu1 %v3213_v4  ;;  %v545_v3 = vld [vmem:[#allocation2 + $0x28] sm:$0xff] }
  0x90   : > { %964 = vmatprep.mubr.bf16.mxu0 %v3214_v5  ;;  %1028 = vmatprep.mubr.bf16.mxu1 %v3216_v6  ;;  %v561_v5 = vld [vmem:[#allocation2 + $0xa8] sm:$0xff] }
  0x97   : > { %965 = vmatmul.mubr.bf16.gmra.mrb[20].mxu0 %v3218_v7  ;;  %1029 = vmatmul.mubr.bf16.gmra.mrb[20].mxu1 %v3219_v8 }
  0x98   : > { %972 = vmatprep.mubr.bf16.mxu0 %v3220_v9  ;;  %1036 = vmatprep.mubr.bf16.mxu1 %v3222_v10 }
  0x9f   : > { %973 = vmatmul.mubr.bf16.gmra.mrb[24].mxu0 %v3224_v11  ;;  %1037 = vmatmul.mubr.bf16.gmra.mrb[24].mxu1 %v3225_v12 }
  0xa0   : > { %980 = vmatprep.mubr.bf16.mxu0 %v3226_v13  ;;  %1044 = vmatprep.mubr.bf16.mxu1 %v3228_v14 }
  0xa7   : > { %981 = vmatmul.mubr.bf16.gmra.mrb[28].mxu0 %v3230_v15  ;;  %1045 = vmatmul.mubr.bf16.gmra.mrb[28].mxu1 %v3231_v16  ;;  %v546_v15 = vld [vmem:[#allocation2 + $0x30] sm:$0xff] }
 0x142   : > { %v2846_v17 = vpop.f32.mrb[0].mxu0  ;;  %v2894_v18 = vpop.f32.mrb[0].mxu1 }
 0x143   : > { %v2847_v20 = vpop.f32.mrb[1].mxu0  ;;  %v2895_v22 = vpop.f32.mrb[1].mxu1 }
 0x144   : > { %v2848_v23 = vadd.f32 %v2847_v20, %v2846_v17  ;;  %v2896_v24 = vadd.f32 %v2895_v22, %v2894_v18  ;;  %v2849_v25 = vpop.f32.mrb[2].mxu0  ;;  %v2897_v26 = vpop.f32.mrb[2].mxu1  ;;  %v562_v17 = vld [vmem:[#allocation2 + $0xb0] sm:$0xff] }
 0x145   : > { %v2850_v28 = vpop.f32.mrb[3].mxu0  ;;  %v2898_v30 = vpop.f32.mrb[3].mxu1 }
 0x146   : > { %v1053_v31 = vadd.f32 %v2848_v23, %v540_v19  ;;  %v1069_v32 = vadd.f32 %v2896_v24, %v556_v21  ;;  %v2851_v33 = vadd.f32 %v2850_v28, %v2849_v25  ;;  %v2899_v34 = vadd.f32 %v2898_v30, %v2897_v26  ;;  %v547_v23 = vld [vmem:[#allocation2 + $0x38] sm:$0xff] }
 0x147   : > { %v563_v25 = vld [vmem:[#allocation2 + $0xb8] sm:$0xff] }
 0x148   : > { %1086 = vst.msk [vmem:[#allocation2] sm:$0xff] %vm1085_vm1, %v1053_v31  ;;  %1102 = vst.msk [vmem:[#allocation2 + $0x80] sm:$0xff] %vm1085_vm1, %v1069_v32  ;;  %v1054_v35 = vadd.f32 %v2851_v33, %v541_v27  ;;  %v1070_v36 = vadd.f32 %v2899_v34, %v557_v29 }
 0x14a   : > { %1087 = vst.msk [vmem:[#allocation2 + $0x8] sm:$0xff] %vm1085_vm1, %v1054_v35  ;;  %1103 = vst.msk [vmem:[#allocation2 + $0x88] sm:$0xff] %vm1085_vm1, %v1070_v36  ;;  %v2852_v37 = vpop.f32.mrb[4].mxu0  ;;  %v2900_v38 = vpop.f32.mrb[4].mxu1  ;;  %v548_v35 = vld [vmem:[#allocation2 + $0x40] sm:$0xff] }
 0x14b   : > { %v2853_v40 = vpop.f32.mrb[5].mxu0  ;;  %v2901_v42 = vpop.f32.mrb[5].mxu1 }
 0x14c   : > { %v2854_v43 = vadd.f32 %v2853_v40, %v2852_v37  ;;  %v2902_v44 = vadd.f32 %v2901_v42, %v2900_v38  ;;  %v2855_v45 = vpop.f32.mrb[6].mxu0  ;;  %v2903_v46 = vpop.f32.mrb[6].mxu1  ;;  %v564_v37 = vld [vmem:[#allocation2 + $0xc0] sm:$0xff] }
 0x14d   : > { %v2856_v48 = vpop.f32.mrb[7].mxu0  ;;  %v2904_v50 = vpop.f32.mrb[7].mxu1 }
 0x14e   : > { %v1055_v51 = vadd.f32 %v2854_v43, %v542_v39  ;;  %v1071_v52 = vadd.f32 %v2902_v44, %v558_v41  ;;  %v2857_v53 = vadd.f32 %v2856_v48, %v2855_v45  ;;  %v2905_v54 = vadd.f32 %v2904_v50, %v2903_v46  ;;  %v549_v43 = vld [vmem:[#allocation2 + $0x48] sm:$0xff] }
 0x14f   : > { %v565_v45 = vld [vmem:[#allocation2 + $0xc8] sm:$0xff] }
 0x150   : > { %1088 = vst.msk [vmem:[#allocation2 + $0x10] sm:$0xff] %vm1085_vm1, %v1055_v51  ;;  %1104 = vst.msk [vmem:[#allocation2 + $0x90] sm:$0xff] %vm1085_vm1, %v1071_v52  ;;  %v1056_v55 = vadd.f32 %v2857_v53, %v543_v47  ;;  %v1072_v56 = vadd.f32 %v2905_v54, %v559_v49 }
 0x152   : > { %1089 = vst.msk [vmem:[#allocation2 + $0x18] sm:$0xff] %vm1085_vm1, %v1056_v55  ;;  %1105 = vst.msk [vmem:[#allocation2 + $0x98] sm:$0xff] %vm1085_vm1, %v1072_v56  ;;  %v2858_v57 = vpop.f32.mrb[8].mxu0  ;;  %v2906_v58 = vpop.f32.mrb[8].mxu1  ;;  %v550_v55 = vld [vmem:[#allocation2 + $0x50] sm:$0xff] }
 0x153   : > { %v2859_v60 = vpop.f32.mrb[9].mxu0  ;;  %v2907_v62 = vpop.f32.mrb[9].mxu1 }
 0x154   : > { %v2860_v63 = vadd.f32 %v2859_v60, %v2858_v57  ;;  %v2908_v0 = vadd.f32 %v2907_v62, %v2906_v58  ;;  %v2861_v1 = vpop.f32.mrb[10].mxu0  ;;  %v2909_v2 = vpop.f32.mrb[10].mxu1  ;;  %v566_v57 = vld [vmem:[#allocation2 + $0xd0] sm:$0xff] }
 0x155   : > { %v2862_v4 = vpop.f32.mrb[11].mxu0  ;;  %v2910_v6 = vpop.f32.mrb[11].mxu1 }
 0x156   : > { %v1057_v7 = vadd.f32 %v2860_v63, %v544_v59  ;;  %v1073_v8 = vadd.f32 %v2908_v0, %v560_v61  ;;  %v2863_v9 = vadd.f32 %v2862_v4, %v2861_v1  ;;  %v2911_v10 = vadd.f32 %v2910_v6, %v2909_v2  ;;  %v551_v63 = vld [vmem:[#allocation2 + $0x58] sm:$0xff] }
 0x157   : > { %v567_v1 = vld [vmem:[#allocation2 + $0xd8] sm:$0xff] }
 0x158   : > { %1090 = vst.msk [vmem:[#allocation2 + $0x20] sm:$0xff] %vm1085_vm1, %v1057_v7  ;;  %1106 = vst.msk [vmem:[#allocation2 + $0xa0] sm:$0xff] %vm1085_vm1, %v1073_v8  ;;  %v1058_v11 = vadd.f32 %v2863_v9, %v545_v3  ;;  %v1074_v12 = vadd.f32 %v2911_v10, %v561_v5 }
 0x15a   : > { %1091 = vst.msk [vmem:[#allocation2 + $0x28] sm:$0xff] %vm1085_vm1, %v1058_v11  ;;  %1107 = vst.msk [vmem:[#allocation2 + $0xa8] sm:$0xff] %vm1085_vm1, %v1074_v12  ;;  %v2864_v13 = vpop.f32.mrb[12].mxu0  ;;  %v2912_v14 = vpop.f32.mrb[12].mxu1  ;;  %v552_v11 = vld [vmem:[#allocation2 + $0x60] sm:$0xff] }
 0x15b   : > { %v2865_v16 = vpop.f32.mrb[13].mxu0  ;;  %v2913_v18 = vpop.f32.mrb[13].mxu1 }
 0x15c   : > { %v2866_v19 = vadd.f32 %v2865_v16, %v2864_v13  ;;  %v2914_v20 = vadd.f32 %v2913_v18, %v2912_v14  ;;  %v2867_v21 = vpop.f32.mrb[14].mxu0  ;;  %v2915_v22 = vpop.f32.mrb[14].mxu1  ;;  %v568_v13 = vld [vmem:[#allocation2 + $0xe0] sm:$0xff] }
 0x15d   : > { %v2868_v24 = vpop.f32.mrb[15].mxu0  ;;  %v2916_v26 = vpop.f32.mrb[15].mxu1 }
 0x15e   : > { %v1059_v27 = vadd.f32 %v2866_v19, %v546_v15  ;;  %v1075_v28 = vadd.f32 %v2914_v20, %v562_v17  ;;  %v2869_v29 = vadd.f32 %v2868_v24, %v2867_v21  ;;  %v2917_v30 = vadd.f32 %v2916_v26, %v2915_v22  ;;  %v553_v19 = vld [vmem:[#allocation2 + $0x68] sm:$0xff] }
 0x15f   : > { %v569_v21 = vld [vmem:[#allocation2 + $0xe8] sm:$0xff] }
 0x160   : > { %1092 = vst.msk [vmem:[#allocation2 + $0x30] sm:$0xff] %vm1085_vm1, %v1059_v27  ;;  %1108 = vst.msk [vmem:[#allocation2 + $0xb0] sm:$0xff] %vm1085_vm1, %v1075_v28  ;;  %v1060_v31 = vadd.f32 %v2869_v29, %v547_v23  ;;  %v1076_v32 = vadd.f32 %v2917_v30, %v563_v25 }
 0x162   : > { %1093 = vst.msk [vmem:[#allocation2 + $0x38] sm:$0xff] %vm1085_vm1, %v1060_v31  ;;  %1109 = vst.msk [vmem:[#allocation2 + $0xb8] sm:$0xff] %vm1085_vm1, %v1076_v32  ;;  %v2870_v33 = vpop.f32.mrb[16].mxu0  ;;  %v2918_v34 = vpop.f32.mrb[16].mxu1  ;;  %v554_v31 = vld [vmem:[#allocation2 + $0x70] sm:$0xff] }
 0x163   : > { %v2871_v36 = vpop.f32.mrb[17].mxu0  ;;  %v2919_v38 = vpop.f32.mrb[17].mxu1 }
 0x164   : > { %v2872_v39 = vadd.f32 %v2871_v36, %v2870_v33  ;;  %v2920_v40 = vadd.f32 %v2919_v38, %v2918_v34  ;;  %v2873_v41 = vpop.f32.mrb[18].mxu0  ;;  %v2921_v42 = vpop.f32.mrb[18].mxu1  ;;  %v570_v33 = vld [vmem:[#allocation2 + $0xf0] sm:$0xff] }
 0x165   : > { %v2874_v44 = vpop.f32.mrb[19].mxu0  ;;  %v2922_v46 = vpop.f32.mrb[19].mxu1 }
 0x166   : > { %v1061_v47 = vadd.f32 %v2872_v39, %v548_v35  ;;  %v1077_v48 = vadd.f32 %v2920_v40, %v564_v37  ;;  %v2875_v49 = vadd.f32 %v2874_v44, %v2873_v41  ;;  %v2923_v50 = vadd.f32 %v2922_v46, %v2921_v42  ;;  %v555_v39 = vld [vmem:[#allocation2 + $0x78] sm:$0xff] }
 0x167   : > { %v571_v41 = vld [vmem:[#allocation2 + $0xf8] sm:$0xff] }
 0x168   : > { %1094 = vst.msk [vmem:[#allocation2 + $0x40] sm:$0xff] %vm1085_vm1, %v1061_v47  ;;  %1110 = vst.msk [vmem:[#allocation2 + $0xc0] sm:$0xff] %vm1085_vm1, %v1077_v48  ;;  %v1062_v51 = vadd.f32 %v2875_v49, %v549_v43  ;;  %v1078_v52 = vadd.f32 %v2923_v50, %v565_v45  ;;  %v1156_v49 = vld [vmem:[%s3608_s20 + $0x10] sm:$0xff] (!%p2797_p0)  ;;  %v1154_v50 = vld [vmem:[%s3608_s20] sm:$0xff] (!%p2797_p0) }
 0x16a   : > { %1095 = vst.msk [vmem:[#allocation2 + $0x48] sm:$0xff] %vm1085_vm1, %v1062_v51  ;;  %1111 = vst.msk [vmem:[#allocation2 + $0xc8] sm:$0xff] %vm1085_vm1, %v1078_v52  ;;  %v2876_v53 = vpop.f32.mrb[20].mxu0  ;;  %v2924_v54 = vpop.f32.mrb[20].mxu1  ;;  %v3429_v51 = vmov (!%p2797_p0), 0   ;;  %v1157_v52 = vld [vmem:[%s3608_s20 + $0x18] sm:$0xff] (!%p2797_p0) }
 0x16b   : > { %v2877_v56 = vpop.f32.mrb[21].mxu0  ;;  %v2925_v58 = vpop.f32.mrb[21].mxu1  ;;  %3233 = vset.pattern.permute.xlu1 (!%p2797_p0), %v3429_v51  ;;  %3232 = vset.pattern.permute.xlu0 (!%p2797_p0), %v3429_v51 }
 0x16c   : > { %v2878_v59 = vadd.f32 %v2877_v56, %v2876_v53  ;;  %v2926_v60 = vadd.f32 %v2925_v58, %v2924_v54  ;;  %v2879_v61 = vpop.f32.mrb[22].mxu0  ;;  %v2927_v62 = vpop.f32.mrb[22].mxu1  ;;  %1198 = vperm.xlu1 (!%p2797_p0), %3233, %v1156_v49   ;;  %1188 = vperm.xlu0 (!%p2797_p0), %3232, %v1154_v50   ;;  %v1155_v53 = vld [vmem:[%s3608_s20 + $0x8] sm:$0xff] (!%p2797_p0)  ;;  %v1161_v56 = vld [vmem:[%s3608_s20 + $0x38] sm:$0xff] (!%p2797_p0)  ;;  %v1394_v58 = vld [vmem:[%s4330_s3] sm:$0xff] (!%p2797_p0) }
 0x16d   : > { %v2880_v0 = vpop.f32.mrb[23].mxu0  ;;  %v2928_v2 = vpop.f32.mrb[23].mxu1  ;;  %1499 = vmatprep.mubr.bf16.mxu0 (!%p2797_p0), %v3429_v51  ;;  %v1159_v54 = vld [vmem:[%s3608_s20 + $0x28] sm:$0xff] (!%p2797_p0)  ;;  %v1128_v50 = vld [vmem:[#allocation2 + $0x30] sm:$0xff] (!%p2797_p0) }
 0x16e   : > { %v1063_v3 = vadd.f32 %v2878_v59, %v550_v55  ;;  %v1079_v4 = vadd.f32 %v2926_v60, %v566_v57  ;;  %v2881_v5 = vadd.f32 %v2880_v0, %v2879_v61  ;;  %v2929_v6 = vadd.f32 %v2928_v2, %v2927_v62  ;;  %v1158_v55 = vld [vmem:[%s3608_s20 + $0x20] sm:$0xff] (!%p2797_p0)  ;;  %v1160_v57 = vld [vmem:[%s3608_s20 + $0x30] sm:$0xff] (!%p2797_p0)  ;;  %v1163_v59 = vld [vmem:[%s3608_s20 + $0x48] sm:$0xff] (!%p2797_p0) }
 0x16f   : > { %v2799_v60 = vcombine.high (!%p2797_p0), %v1394_v58, %v1394_v58  ;;  %v2798_v61 = vcombine.low (!%p2797_p0), %v1394_v58, %v1394_v58  ;;  %v1162_v62 = vld [vmem:[%s3608_s20 + $0x40] sm:$0xff] (!%p2797_p0)  ;;  %v1165_v0 = vld [vmem:[%s3608_s20 + $0x58] sm:$0xff] (!%p2797_p0)  ;;  %v1167_v2 = vld [vmem:[%s3608_s20 + $0x68] sm:$0xff] (!%p2797_p0) }
 0x170   : > { %1096 = vst.msk [vmem:[#allocation2 + $0x50] sm:$0xff] %vm1085_vm1, %v1063_v3  ;;  %1112 = vst.msk [vmem:[#allocation2 + $0xd0] sm:$0xff] %vm1085_vm1, %v1079_v4  ;;  %v1064_v7 = vadd.f32 %v2881_v5, %v551_v63  ;;  %v1080_v8 = vadd.f32 %v2929_v6, %v567_v1  ;;  %1203 = vperm.xlu1 (!%p2797_p0), %3233, %v1157_v52   ;;  %1193 = vperm.xlu0 (!%p2797_p0), %3232, %v1155_v53   ;;  %v1164_v1 = vld [vmem:[%s3608_s20 + $0x50] sm:$0xff] (!%p2797_p0)  ;;  %v1166_v3 = vld [vmem:[%s3608_s20 + $0x60] sm:$0xff] (!%p2797_p0) }
 0x171   : > { %2800 = vmatprep.subr.msk.bf16.mxu0 (!%p2797_p0), %vm1460_vm2, %v2799_v60  ;;  %v1462_v63 = vsel (!%p2797_p0), %vm1460_vm2, %v2798_v61, 0  ;;  %v1169_v4 = vld [vmem:[%s3608_s20 + $0x78] sm:$0xff] (!%p2797_p0)  ;;  %v1168_v5 = vld [vmem:[%s3608_s20 + $0x70] sm:$0xff] (!%p2797_p0)  ;;  %v1171_v6 = vld [vmem:[%s3608_s20 + $0x88] sm:$0xff] (!%p2797_p0) }
 0x172   : > { %1097 = vst.msk [vmem:[#allocation2 + $0x58] sm:$0xff] %vm1085_vm1, %v1064_v7  ;;  %1113 = vst.msk [vmem:[#allocation2 + $0xd8] sm:$0xff] %vm1085_vm1, %v1080_v8  ;;  %v2882_v9 = vpop.f32.mrb[24].mxu0  ;;  %v2930_v10 = vpop.f32.mrb[24].mxu1  ;;  %1468 = vmatpush1.bf16.msra.mxu0 (!%p2797_p0), %v1462_v63  ;;  %v1170_v7 = vld [vmem:[%s3608_s20 + $0x80] sm:$0xff] (!%p2797_p0)  ;;  %v1173_v8 = vld [vmem:[%s3608_s20 + $0x98] sm:$0xff] (!%p2797_p0) }
 0x173   : > { %v2883_v12 = vpop.f32.mrb[25].mxu0  ;;  %v2931_v14 = vpop.f32.mrb[25].mxu1  ;;  %v1130_v58 = vld [vmem:[#allocation2 + $0x40] sm:$0xff] (!%p2797_p0) }
 0x174   : > { %v2884_v15 = vadd.f32 %v2883_v12, %v2882_v9  ;;  %v2932_v16 = vadd.f32 %v2931_v14, %v2930_v10  ;;  %v2885_v17 = vpop.f32.mrb[26].mxu0  ;;  %v2933_v18 = vpop.f32.mrb[26].mxu1  ;;  %1213 = vperm.xlu1 (!%p2797_p0), %3233, %v1159_v54   ;;  %1208 = vperm.xlu0 (!%p2797_p0), %3232, %v1158_v55   ;;  %v1172_v9 = vld [vmem:[%s3608_s20 + $0x90] sm:$0xff] (!%p2797_p0)  ;;  %v1175_v10 = vld [vmem:[%s3608_s20 + $0xa8] sm:$0xff] (!%p2797_p0)  ;;  %v1177_v12 = vld [vmem:[%s3608_s20 + $0xb8] sm:$0xff] (!%p2797_p0) }
 0x175   : > { %v2886_v20 = vpop.f32.mrb[27].mxu0  ;;  %v2934_v22 = vpop.f32.mrb[27].mxu1  ;;  %v1179_v14 = vld [vmem:[%s3608_s20 + $0xc8] sm:$0xff] (!%p2797_p0) }
 0x176   : > { %v1065_v23 = vadd.f32 %v2884_v15, %v552_v11  ;;  %v1081_v24 = vadd.f32 %v2932_v16, %v568_v13  ;;  %v2887_v25 = vadd.f32 %v2886_v20, %v2885_v17  ;;  %v2935_v26 = vadd.f32 %v2934_v22, %v2933_v18  ;;  %v1174_v11 = vld [vmem:[%s3608_s20 + $0xa0] sm:$0xff] (!%p2797_p0)  ;;  %v1176_v13 = vld [vmem:[%s3608_s20 + $0xb0] sm:$0xff] (!%p2797_p0)  ;;  %v1181_v16 = vld [vmem:[%s3608_s20 + $0xd8] sm:$0xff] (!%p2797_p0) }
 0x177   : > { %v1178_v15 = vld [vmem:[%s3608_s20 + $0xc0] sm:$0xff] (!%p2797_p0)  ;;  %v1180_v17 = vld [vmem:[%s3608_s20 + $0xd0] sm:$0xff] (!%p2797_p0)  ;;  %v1183_v18 = vld [vmem:[%s3608_s20 + $0xe8] sm:$0xff] (!%p2797_p0) }
 0x178   : > { %1098 = vst.msk [vmem:[#allocation2 + $0x60] sm:$0xff] %vm1085_vm1, %v1065_v23  ;;  %1114 = vst.msk [vmem:[#allocation2 + $0xe0] sm:$0xff] %vm1085_vm1, %v1081_v24  ;;  %v1066_v27 = vadd.f32 %v2887_v25, %v553_v19  ;;  %v1082_v28 = vadd.f32 %v2935_v26, %v569_v21  ;;  %1223 = vperm.xlu1 (!%p2797_p0), %3233, %v1161_v56   ;;  %1218 = vperm.xlu0 (!%p2797_p0), %3232, %v1160_v57   ;;  %v1182_v19 = vld [vmem:[%s3608_s20 + $0xe0] sm:$0xff] (!%p2797_p0)  ;;  %v1185_v20 = vld [vmem:[%s3608_s20 + $0xf8] sm:$0xff] (!%p2797_p0) }
 0x179   : > { %v1184_v21 = vld [vmem:[%s3608_s20 + $0xf0] sm:$0xff] (!%p2797_p0)  ;;  %v3236_v23 = vld [vmem:[%s4332_s5] sm:$0xff] (!%p2797_p0)   ;;  %v1123_v25 = vld [vmem:[#allocation2 + $0x8] sm:$0xff] (!%p2797_p0) }
 0x17a   : > { %1099 = vst.msk [vmem:[#allocation2 + $0x68] sm:$0xff] %vm1085_vm1, %v1066_v27  ;;  %1115 = vst.msk [vmem:[#allocation2 + $0xe8] sm:$0xff] %vm1085_vm1, %v1082_v28  ;;  %v2888_v29 = vpop.f32.mrb[28].mxu0  ;;  %v2936_v30 = vpop.f32.mrb[28].mxu1  ;;  %v1122_v24 = vld [vmem:[#allocation2] sm:$0xff] (!%p2797_p0)  ;;  %3030 = vmatprep.subr.bf16.mxu0 (!%p2797_p0), %v3236_v23  ;;  %v3237_v26 = vld [vmem:[%s4332_s5 + $0x8] sm:$0xff] (!%p2797_p0)   ;;  %3094 = vmatprep.subr.bf16.mxu1 (!%p2797_p0), %v3236_v23 }
 0x17b   : > { %v2889_v32 = vpop.f32.mrb[29].mxu0  ;;  %v2937_v34 = vpop.f32.mrb[29].mxu1  ;;  %3102 = vmatpush3.bf16.msra.mxu1 (!%p2797_p0), %v3236_v23  ;;  %v1131_v56 = vld [vmem:[#allocation2 + $0x48] sm:$0xff] (!%p2797_p0)  ;;  %v1133_v63 = vld [vmem:[#allocation2 + $0x58] sm:$0xff] (!%p2797_p0) }
 0x17c   : > { %v2890_v35 = vadd.f32 %v2889_v32, %v2888_v29  ;;  %v2938_v36 = vadd.f32 %v2937_v34, %v2936_v30  ;;  %v2891_v37 = vpop.f32.mrb[30].mxu0  ;;  %v2939_v38 = vpop.f32.mrb[30].mxu1  ;;  %1121 = sbr.rel (%p2797_p0) target bundleno = 1730 (0x6c2), region = 94  ;;  %1233 = vperm.xlu1 (!%p2797_p0), %3233, %v1163_v59   ;;  %1228 = vperm.xlu0 (!%p2797_p0), %3232, %v1162_v62   ;;  %v3238_v32 = vld [vmem:[%s4332_s5 + $0x10] sm:$0xff] (!%p2797_p0)   ;;  %v1125_v34 = vld [vmem:[#allocation2 + $0x18] sm:$0xff] (!%p2797_p0) }
 0x17d   : > { %v2892_v40 = vpop.f32.mrb[31].mxu0  ;;  %v2940_v42 = vpop.f32.mrb[31].mxu1  ;;  %3095 = vmatprep.subr.bf16.mxu1 (!%p2797_p0), %v3237_v26 }
 0x17e   : > { %v1067_v43 = vadd.f32 %v2890_v35, %v554_v31  ;;  %v1083_v44 = vadd.f32 %v2938_v36, %v570_v33  ;;  %v2893_v45 = vadd.f32 %v2892_v40, %v2891_v37  ;;  %v2941_v46 = vadd.f32 %v2940_v42, %v2939_v38  ;;  %v1124_v33 = vld [vmem:[#allocation2 + $0x10] sm:$0xff] (!%p2797_p0)  ;;  %v3239_v38 = vld [vmem:[%s4332_s5 + $0x18] sm:$0xff] (!%p2797_p0)  }
 0x17f   : > { %3103 = vmatpush3.bf16.msra.mxu1 (!%p2797_p0), %v3237_v26 }
 0x180   : > { %1100 = vst.msk [vmem:[#allocation2 + $0x70] sm:$0xff] %vm1085_vm1, %v1067_v43  ;;  %1116 = vst.msk [vmem:[#allocation2 + $0xf0] sm:$0xff] %vm1085_vm1, %v1083_v44  ;;  %v1068_v47 = vadd.f32 %v2893_v45, %v555_v39  ;;  %v1084_v48 = vadd.f32 %v2941_v46, %v571_v41  ;;  %1243 = vperm.xlu1 (!%p2797_p0), %3233, %v1165_v0   ;;  %1238 = vperm.xlu0 (!%p2797_p0), %3232, %v1164_v1   ;;  %v1127_v41 = vld [vmem:[#allocation2 + $0x28] sm:$0xff] (!%p2797_p0)  ;;  %v1126_v43 = vld [vmem:[#allocation2 + $0x20] sm:$0xff] (!%p2797_p0) }
 0x181   : > { %3096 = vmatprep.subr.bf16.mxu1 (!%p2797_p0), %v3238_v32  ;;  %v1132_v1 = vld [vmem:[#allocation2 + $0x50] sm:$0xff] (!%p2797_p0) }
 0x182   : > { %1101 = vst.msk [vmem:[#allocation2 + $0x78] sm:$0xff] %vm1085_vm1, %v1068_v47  ;;  %1117 = vst.msk [vmem:[#allocation2 + $0xf8] sm:$0xff] %vm1085_vm1, %v1084_v48  ;;  %v1129_v48 = vld [vmem:[#allocation2 + $0x38] sm:$0xff] (!%p2797_p0) }
 0x183   : > { %3104 = vmatpush3.bf16.msra.mxu1 %v3238_v32 }
 0x184   : > { %1253 = vperm.xlu1 %3233, %v1167_v2   ;;  %1248 = vperm.xlu0 %3232, %v1166_v3  }
 0x185   : > { %3097 = vmatprep.subr.bf16.mxu1 %v3239_v38 }
 0x187   : > { %3105 = vmatpush3.bf16.msra.mxu1 %v3239_v38 }
 0x188   : > { %1263 = vperm.xlu1 %3233, %v1169_v4   ;;  %1258 = vperm.xlu0 %3232, %v1168_v5  }
 0x18c   : > { %1273 = vperm.xlu1 %3233, %v1171_v6   ;;  %1268 = vperm.xlu0 %3232, %v1170_v7   ;;  %v1135_v6 = vld [vmem:[#allocation2 + $0x68] sm:$0xff] }
 0x190   : > { %1283 = vperm.xlu1 %3233, %v1173_v8   ;;  %1278 = vperm.xlu0 %3232, %v1172_v9   ;;  %v1134_v8 = vld [vmem:[#allocation2 + $0x60] sm:$0xff] }
 0x194   : > { %1293 = vperm.xlu1 %3233, %v1175_v10   ;;  %1288 = vperm.xlu0 %3232, %v1174_v11  }
 0x198   : > { %1303 = vperm.xlu1 %3233, %v1177_v12   ;;  %1298 = vperm.xlu0 %3232, %v1176_v13   ;;  %v1137_v13 = vld [vmem:[#allocation2 + $0x78] sm:$0xff] }
 0x19c   : > { %1313 = vperm.xlu1 %3233, %v1179_v14   ;;  %1308 = vperm.xlu0 %3232, %v1178_v15   ;;  %v1136_v15 = vld [vmem:[#allocation2 + $0x70] sm:$0xff] }
 0x1a0   : > { %1323 = vperm.xlu1 %3233, %v1181_v16   ;;  %1318 = vperm.xlu0 %3232, %v1180_v17  }
 0x1a4   : > { %1333 = vperm.xlu1 %3233, %v1183_v18   ;;  %1328 = vperm.xlu0 %3232, %v1182_v19  }
 0x1a8   : > { %1343 = vperm.xlu1 %3233, %v1185_v20   ;;  %1338 = vperm.xlu0 %3232, %v1184_v21   ;;  %v1139_v20 = vld [vmem:[#allocation2 + $0x88] sm:$0xff] }
 0x1eb   : > { %v1189_v22 = vpop.permute.xlu0 %1188  ;;  %v1199_v27 = vpop.permute.xlu1 %1198 }
 0x1ec   : > { %v1346_v29 = vmul.f32 %v1189_v22, %v1122_v24  ;;  %v1348_v36 = vmul.f32 %v1199_v27, %v1124_v33  ;;  %v1138_v22 = vld [vmem:[#allocation2 + $0x80] sm:$0xff]  ;;  %v1141_v27 = vld [vmem:[#allocation2 + $0x98] sm:$0xff] }
 0x1ef   : > { %v1194_v28 = vpop.permute.xlu0 %1193  ;;  %v1204_v35 = vpop.permute.xlu1 %1203 }
 0x1f0   : > { %v1347_v30 = vmul.f32 %v1194_v28, %v1123_v25  ;;  %v1349_v37 = vmul.f32 %v1204_v35, %v1125_v34  ;;  %v1143_v34 = vld [vmem:[#allocation2 + $0xa8] sm:$0xff] }
 0x1f2   : > { %v1378_v31 = vpack.c.bf16 %v1347_v30, %v1346_v29  ;;  %v1379_v39 = vpack.c.bf16 %v1349_v37, %v1348_v36  ;;  %v1140_v29 = vld [vmem:[#allocation2 + $0x90] sm:$0xff]  ;;  %v1142_v36 = vld [vmem:[#allocation2 + $0xa0] sm:$0xff] }
 0x1f3   : > { %v1214_v40 = vpop.permute.xlu1 %1213  ;;  %v1209_v42 = vpop.permute.xlu0 %1208 }
 0x1f4   : > { %2801 = vmatmul.mubr.msk.bf16.vlgmr.msra.gmra.mrb[0].mxu0 %vm1085_vm1, %v1378_v31  ;;  %v1351_v44 = vmul.f32 %v1214_v40, %v1127_v41  ;;  %v1350_v45 = vmul.f32 %v1209_v42, %v1126_v43  ;;  %v1145_v41 = vld [vmem:[#allocation2 + $0xb8] sm:$0xff]  ;;  %v1144_v43 = vld [vmem:[#allocation2 + $0xb0] sm:$0xff] }
 0x1f5   : > { %1509 = vmatprep.mubr.bf16.mxu0 %v3429_v51  ;;  %3031 = vmatpush3.bf16.msra.mxu0 %v3236_v23 }
 0x1f6   : > { %3032 = vmatprep.subr.bf16.mxu0 %v3237_v26  ;;  %v1380_v46 = vpack.c.bf16 %v1351_v44, %v1350_v45 }
 0x1f7   : > { %v1224_v47 = vpop.permute.xlu1 %1223  ;;  %v1219_v49 = vpop.permute.xlu0 %1218 }
 0x1f8   : > { %v1353_v52 = vmul.f32 %v1224_v47, %v1129_v48  ;;  %v1352_v53 = vmul.f32 %v1219_v49, %v1128_v50  ;;  %v1147_v49 = vld [vmem:[#allocation2 + $0xc8] sm:$0xff] }
 0x1f9   : > { %3033 = vmatpush3.bf16.msra.mxu0 %v3237_v26 }
 0x1fa   : > { %3034 = vmatprep.subr.bf16.mxu0 %v3238_v32  ;;  %v1381_v54 = vpack.c.bf16 %v1353_v52, %v1352_v53  ;;  %v1146_v52 = vld [vmem:[#allocation2 + $0xc0] sm:$0xff]  ;;  %v3241_v53 = vld [vmem:[%s4332_s5 + $0x28] sm:$0xff]  }
 0x1fb   : > { %v1234_v55 = vpop.permute.xlu1 %1233  ;;  %v1229_v57 = vpop.permute.xlu0 %1228 }
 0x1fc   : > { %2802 = vmatmul.mubr.msk.bf16.gmra.mrb[4].mxu0 %vm1085_vm1, %v1379_v39  ;;  %v1355_v59 = vmul.f32 %v1234_v55, %v1131_v56  ;;  %v1354_v60 = vmul.f32 %v1229_v57, %v1130_v58  ;;  %v3242_v56 = vld [vmem:[%s4332_s5 + $0x30] sm:$0xff]  }
 0x1fd   : > { %1519 = vmatprep.mubr.bf16.mxu0 %v3429_v51  ;;  %3035 = vmatpush3.bf16.msra.mxu0 %v3238_v32 }
 0x1fe   : > { %3036 = vmatprep.subr.bf16.mxu0 %v3239_v38  ;;  %v1382_v61 = vpack.c.bf16 %v1355_v59, %v1354_v60  ;;  %v1149_v59 = vld [vmem:[#allocation2 + $0xd8] sm:$0xff] }
 0x1ff   : > { %v1244_v62 = vpop.permute.xlu1 %1243  ;;  %v1239_v0 = vpop.permute.xlu0 %1238 }
 0x200   : > { %v1357_v2 = vmul.f32 %v1244_v62, %v1133_v63  ;;  %v1356_v3 = vmul.f32 %v1239_v0, %v1132_v1  ;;  %v3243_v62 = vld [vmem:[%s4332_s5 + $0x38] sm:$0xff]  }
 0x201   : > { %3037 = vmatpush3.bf16.msra.mxu0 %v3239_v38 }
 0x202   : > { %v1383_v4 = vpack.c.bf16 %v1357_v2, %v1356_v3  ;;  %v1151_v3 = vld [vmem:[#allocation2 + $0xe8] sm:$0xff] }
 0x203   : > { %v1254_v5 = vpop.permute.xlu1 %1253  ;;  %v1249_v7 = vpop.permute.xlu0 %1248 }
 0x204   : > { %2803 = vmatmul.mubr.msk.bf16.gmra.mrb[8].mxu0 %vm1085_vm1, %v1380_v46  ;;  %v1359_v9 = vmul.f32 %v1254_v5, %v1135_v6  ;;  %v1358_v10 = vmul.f32 %v1249_v7, %v1134_v8  ;;  %v3240_v46 = vld [vmem:[%s4332_s5 + $0x20] sm:$0xff]  }
 0x205   : > { %1529 = vmatprep.mubr.bf16.mxu0 %v3429_v51  ;;  %3038 = vmatprep.subr.bf16.mxu0 %v3240_v46  ;;  %v1150_v5 = vld [vmem:[#allocation2 + $0xe0] sm:$0xff] }
 0x206   : > { %v1384_v11 = vpack.c.bf16 %v1359_v9, %v1358_v10  ;;  %3098 = vmatprep.subr.bf16.mxu1 %v3240_v46  ;;  %3039 = vmatpush3.bf16.msra.mxu0 %v3240_v46  ;;  %v1153_v10 = vld [vmem:[#allocation2 + $0xf8] sm:$0xff] }
 0x207   : > { %v1264_v12 = vpop.permute.xlu1 %1263  ;;  %v1259_v14 = vpop.permute.xlu0 %1258  ;;  %3106 = vmatpush3.bf16.msra.mxu1 %v3240_v46  ;;  %3040 = vmatprep.subr.bf16.mxu0 %v3241_v53 }
 0x208   : > { %v1361_v16 = vmul.f32 %v1264_v12, %v1137_v13  ;;  %v1360_v17 = vmul.f32 %v1259_v14, %v1136_v15  ;;  %3099 = vmatprep.subr.bf16.mxu1 %v3241_v53  ;;  %v1152_v12 = vld [vmem:[#allocation2 + $0xf0] sm:$0xff] }
 0x20a   : > { %v1385_v18 = vpack.c.bf16 %v1361_v16, %v1360_v17  ;;  %3041 = vmatpush3.bf16.msra.mxu0 %v3241_v53  ;;  %v1397_v16 = vlaneseq }
 0x20b   : > { %v1274_v19 = vpop.permute.xlu1 %1273  ;;  %v1269_v21 = vpop.permute.xlu0 %1268  ;;  %3107 = vmatpush3.bf16.msra.mxu1 %v3241_v53  ;;  %3042 = vmatprep.subr.bf16.mxu0 %v3242_v56 }
 0x20c   : > { %2804 = vmatmul.mubr.msk.bf16.gmra.mrb[12].mxu0 %vm1085_vm1, %v1381_v54  ;;  %v1363_v23 = vmul.f32 %v1274_v19, %v1139_v20  ;;  %v1362_v24 = vmul.f32 %v1269_v21, %v1138_v22  ;;  %3100 = vmatprep.subr.bf16.mxu1 %v3242_v56  ;;  %v3830_v17 = vshrl.u32 %v1397_v16, 7  ;;  %v1395_v19 = vld [vmem:[%s4331_s4] sm:$0x3] }
 0x20d   : > { %1539 = vmatprep.mubr.bf16.mxu0 %v3429_v51 }
 0x20e   : > { %v1386_v25 = vpack.c.bf16 %v1363_v23, %v1362_v24  ;;  %3043 = vmatpush3.bf16.msra.mxu0 %v3242_v56  ;;  %v1403_v20 = vsub.s32 1, %v3830_v17 }
 0x20f   : > { %v1284_v26 = vpop.permute.xlu1 %1283  ;;  %v1279_v28 = vpop.permute.xlu0 %1278  ;;  %3108 = vmatpush3.bf16.msra.mxu1 %v3242_v56  ;;  %3044 = vmatprep.subr.bf16.mxu0 %v3243_v62 }
 0x210   : > { %v1365_v30 = vmul.f32 %v1284_v26, %v1141_v27  ;;  %v1364_v31 = vmul.f32 %v1279_v28, %v1140_v29  ;;  %3101 = vmatprep.subr.bf16.mxu1 %v3243_v62  ;;  %v3839_v22 = vrot.slane %v1395_v19, %v1403_v20 }
 0x212   : > { %v1387_v32 = vpack.c.bf16 %v1365_v30, %v1364_v31  ;;  %3045 = vmatpush3.bf16.msra.mxu0 %v3243_v62 }
 0x213   : > { %v1294_v33 = vpop.permute.xlu1 %1293  ;;  %v1289_v35 = vpop.permute.xlu0 %1288  ;;  %3109 = vmatpush3.bf16.msra.mxu1 %v3243_v62 }
 0x214   : > { %2805 = vmatmul.mubr.msk.bf16.gmra.mrb[16].mxu0 %vm1085_vm1, %v1382_v61  ;;  %v1367_v37 = vmul.f32 %v1294_v33, %v1143_v34  ;;  %v1366_v38 = vmul.f32 %v1289_v35, %v1142_v36  ;;  %v1148_v61 = vld [vmem:[#allocation2 + $0xd0] sm:$0xff] }
 0x215   : > { %1549 = vmatprep.mubr.bf16.mxu0 %v3429_v51 }
 0x216   : > { %v1388_v39 = vpack.c.bf16 %v1367_v37, %v1366_v38 }
 0x217   : > { %v1304_v40 = vpop.permute.xlu1 %1303  ;;  %v1299_v42 = vpop.permute.xlu0 %1298 }
 0x218   : > { %v1369_v44 = vmul.f32 %v1304_v40, %v1145_v41  ;;  %v1368_v45 = vmul.f32 %v1299_v42, %v1144_v43 }
 0x21a   : > { %v1389_v47 = vpack.c.bf16 %v1369_v44, %v1368_v45 }
 0x21b   : > { %v1314_v48 = vpop.permute.xlu1 %1313  ;;  %v1309_v50 = vpop.permute.xlu0 %1308 }
 0x21c   : > { %2806 = vmatmul.mubr.msk.bf16.gmra.mrb[20].mxu0 %vm1085_vm1, %v1383_v4  ;;  %v1371_v54 = vmul.f32 %v1314_v48, %v1147_v49  ;;  %v1370_v55 = vmul.f32 %v1309_v50, %v1146_v52 }
 0x21d   : > { %1559 = vmatprep.mubr.bf16.mxu0 %v3429_v51 }
 0x21e   : > { %v1390_v57 = vpack.c.bf16 %v1371_v54, %v1370_v55 }
 0x21f   : > { %v1324_v58 = vpop.permute.xlu1 %1323  ;;  %v1319_v60 = vpop.permute.xlu0 %1318 }
 0x220   : > { %v1373_v63 = vmul.f32 %v1324_v58, %v1149_v59  ;;  %v1372_v0 = vmul.f32 %v1319_v60, %v1148_v61 }
 0x222   : > { %v1391_v1 = vpack.c.bf16 %v1373_v63, %v1372_v0 }
 0x223   : > { %v1334_v2 = vpop.permute.xlu1 %1333  ;;  %v1329_v4 = vpop.permute.xlu0 %1328 }
 0x224   : > { %2807 = vmatmul.mubr.msk.bf16.gmra.mrb[24].mxu0 %vm1085_vm1, %v1384_v11  ;;  %v1375_v6 = vmul.f32 %v1334_v2, %v1151_v3  ;;  %v1374_v7 = vmul.f32 %v1329_v4, %v1150_v5 }
 0x225   : > { %1569 = vmatprep.mubr.bf16.mxu0 %v3429_v51 }
 0x226   : > { %v1392_v8 = vpack.c.bf16 %v1375_v6, %v1374_v7 }
 0x227   : > { %v1344_v9 = vpop.permute.xlu1 %1343  ;;  %v1339_v11 = vpop.permute.xlu0 %1338 }
 0x228   : > { %v1377_v13 = vmul.f32 %v1344_v9, %v1153_v10  ;;  %v1376_v14 = vmul.f32 %v1339_v11, %v1152_v12 }
 0x22a   : > { %v1393_v15 = vpack.c.bf16 %v1377_v13, %v1376_v14 }
 0x22c   : > { %2808 = vmatmul.mubr.msk.bf16.gmra.mrb[28].mxu0 %vm1085_vm1, %v1385_v18  ;;  %v1399_v18 = vsub.s32 0, %v3830_v17 }
 0x22d   : > { %1579 = vmatprep.mubr.bf16.mxu0 %v3429_v51 }
 0x22e   : > { %v3837_v21 = vrot.slane %v1395_v19, %v1399_v18 }
 0x234   : > { %2809 = vmatmul.mubr.msk.bf16.gmra.mrb[32].mxu0 %vm1085_vm1, %v1386_v25 }
 0x235   : > { %1589 = vmatprep.mubr.bf16.mxu0 %v3429_v51 }
 0x23c   : > { %2810 = vmatmul.mubr.msk.bf16.gmra.mrb[36].mxu0 %vm1085_vm1, %v1387_v32 }
 0x23d   : > { %1599 = vmatprep.mubr.bf16.mxu0 %v3429_v51 }
 0x244   : > { %2811 = vmatmul.mubr.msk.bf16.gmra.mrb[40].mxu0 %vm1085_vm1, %v1388_v39 }
 0x245   : > { %1609 = vmatprep.mubr.bf16.mxu0 %v3429_v51 }
 0x24c   : > { %2812 = vmatmul.mubr.msk.bf16.gmra.mrb[44].mxu0 %vm1085_vm1, %v1389_v47 }
 0x24d   : > { %1619 = vmatprep.mubr.bf16.mxu0 %v3429_v51 }
 0x254   : > { %2813 = vmatmul.mubr.msk.bf16.gmra.mrb[48].mxu0 %vm1085_vm1, %v1390_v57 }
 0x255   : > { %1629 = vmatprep.mubr.bf16.mxu0 %v3429_v51 }
 0x25c   : > { %2814 = vmatmul.mubr.msk.bf16.gmra.mrb[52].mxu0 %vm1085_vm1, %v1391_v1 }
 0x25d   : > { %1639 = vmatprep.mubr.bf16.mxu0 %v3429_v51 }
 0x264   : > { %2815 = vmatmul.mubr.msk.bf16.gmra.mrb[56].mxu0 %vm1085_vm1, %v1392_v8 }
 0x265   : > { %1649 = vmatprep.mubr.bf16.mxu0 %v3429_v51 }
 0x26c   : > { %2816 = vmatmul.mubr.msk.bf16.gmra.mrb[60].mxu0 %vm1085_vm1, %v1393_v15 }
 0x2c7   : > { %v1501_v51 = vpop.f32.mrb[0].mxu0 }
 0x2c8   : > { %v1502_v23 = vadd.f32 %v1501_v51, %v3837_v21  ;;  %v1503_v24 = vpop.f32.mrb[1].mxu0 }
 0x2c9   : > { %v1504_v25 = vadd.f32 %v1503_v24, %v3839_v22  ;;  %v1505_v26 = vpop.f32.mrb[2].mxu0 }
 0x2ca   : > { %v1506_v27 = vadd.f32 %v1505_v26, %v3837_v21  ;;  %v1507_v28 = vpop.f32.mrb[3].mxu0  ;;  %v1660_v30 = vmax.f32 %v1502_v23, 0.0 }
 0x2cb   : > { %v1508_v29 = vadd.f32 %v1507_v28, %v3839_v22  ;;  %v1661_v32 = vmax.f32 %v1504_v25, 0.0 }
 0x2cc   : > { %v1662_v31 = vmax.f32 %v1506_v27, 0.0 }
 0x2cd   : > { %v1663_v33 = vmax.f32 %v1508_v29, 0.0 }
 0x2ce   : > { %v3845_v34 = vpack.c.bf16 %v1662_v31, %v1660_v30 }
 0x2cf   : > { %v1724_v35 = vpack.c.bf16 %v1663_v33, %v1661_v32  ;;  %v1511_v36 = vpop.f32.mrb[4].mxu0 }
 0x2d0   : > { %v1512_v37 = vadd.f32 %v1511_v36, %v3837_v21  ;;  %v1513_v38 = vpop.f32.mrb[5].mxu0 }
 0x2d1   : > { %v1514_v39 = vadd.f32 %v1513_v38, %v3839_v22  ;;  %v1515_v40 = vpop.f32.mrb[6].mxu0  ;;  %3046 = vmatprep.mubr.bf16.mxu0 %v1724_v35 }
 0x2d2   : > { %v1516_v41 = vadd.f32 %v1515_v40, %v3837_v21  ;;  %v1517_v42 = vpop.f32.mrb[7].mxu0  ;;  %v1664_v44 = vmax.f32 %v1512_v37, 0.0 }
 0x2d3   : > { %v1518_v43 = vadd.f32 %v1517_v42, %v3839_v22  ;;  %v1665_v46 = vmax.f32 %v1514_v39, 0.0 }
 0x2d4   : > { %v1666_v45 = vmax.f32 %v1516_v41, 0.0 }
 0x2d5   : > { %v1667_v47 = vmax.f32 %v1518_v43, 0.0 }
 0x2d6   : > { %v3851_v48 = vpack.c.bf16 %v1666_v45, %v1664_v44 }
 0x2d7   : > { %v1725_v49 = vpack.c.bf16 %v1667_v47, %v1665_v46  ;;  %v1521_v50 = vpop.f32.mrb[8].mxu0 }
 0x2d8   : > { %v1522_v52 = vadd.f32 %v1521_v50, %v3837_v21  ;;  %v1523_v53 = vpop.f32.mrb[9].mxu0 }
 0x2d9   : > { %v1524_v54 = vadd.f32 %v1523_v53, %v3839_v22  ;;  %v1525_v55 = vpop.f32.mrb[10].mxu0  ;;  %3047 = vmatmul.mubr.bf16.vlgmr.msra.gmra.mrb[64].mxu0 %v1725_v49 }
 0x2da   : > { %v1526_v56 = vadd.f32 %v1525_v55, %v3837_v21  ;;  %v1527_v57 = vpop.f32.mrb[11].mxu0  ;;  %v1668_v59 = vmax.f32 %v1522_v52, 0.0 }
 0x2db   : > { %v1528_v58 = vadd.f32 %v1527_v57, %v3839_v22  ;;  %v1669_v61 = vmax.f32 %v1524_v54, 0.0 }
 0x2dc   : > { %v1670_v60 = vmax.f32 %v1526_v56, 0.0 }
 0x2dd   : > { %v1671_v62 = vmax.f32 %v1528_v58, 0.0 }
 0x2de   : > { %v3857_v63 = vpack.c.bf16 %v1670_v60, %v1668_v59 }
 0x2df   : > { %v1531_v0 = vpop.f32.mrb[12].mxu0  ;;  %v1726_v1 = vpack.c.bf16 %v1671_v62, %v1669_v61 }
 0x2e0   : > { %v1532_v2 = vadd.f32 %v1531_v0, %v3837_v21  ;;  %v1533_v3 = vpop.f32.mrb[13].mxu0 }
 0x2e1   : > { %v1534_v4 = vadd.f32 %v1533_v3, %v3839_v22  ;;  %v1535_v5 = vpop.f32.mrb[14].mxu0  ;;  %3050 = vmatprep.mubr.bf16.mxu1 %v1726_v1 }
 0x2e2   : > { %v1536_v6 = vadd.f32 %v1535_v5, %v3837_v21  ;;  %v1537_v7 = vpop.f32.mrb[15].mxu0  ;;  %v1672_v9 = vmax.f32 %v1532_v2, 0.0 }
 0x2e3   : > { %v1538_v8 = vadd.f32 %v1537_v7, %v3839_v22  ;;  %v1673_v11 = vmax.f32 %v1534_v4, 0.0 }
 0x2e4   : > { %v1674_v10 = vmax.f32 %v1536_v6, 0.0 }
 0x2e5   : > { %v1675_v12 = vmax.f32 %v1538_v8, 0.0 }
 0x2e6   : > { %v3863_v13 = vpack.c.bf16 %v1674_v10, %v1672_v9 }
 0x2e7   : > { %v1727_v14 = vpack.c.bf16 %v1675_v12, %v1673_v11  ;;  %v1541_v15 = vpop.f32.mrb[16].mxu0 }
 0x2e8   : > { %v1542_v16 = vadd.f32 %v1541_v15, %v3837_v21  ;;  %v1543_v18 = vpop.f32.mrb[17].mxu0 }
 0x2e9   : > { %v1544_v19 = vadd.f32 %v1543_v18, %v3839_v22  ;;  %v1545_v20 = vpop.f32.mrb[18].mxu0  ;;  %3051 = vmatmul.mubr.bf16.vlgmr.msra.gmra.mrb[0].mxu1 %v1727_v14 }
 0x2ea   : > { %v1546_v51 = vadd.f32 %v1545_v20, %v3837_v21  ;;  %v1547_v23 = vpop.f32.mrb[19].mxu0  ;;  %v1676_v25 = vmax.f32 %v1542_v16, 0.0 }
 0x2eb   : > { %v1548_v24 = vadd.f32 %v1547_v23, %v3839_v22  ;;  %v1677_v27 = vmax.f32 %v1544_v19, 0.0 }
 0x2ec   : > { %v1678_v26 = vmax.f32 %v1546_v51, 0.0 }
 0x2ed   : > { %v1679_v28 = vmax.f32 %v1548_v24, 0.0 }
 0x2ee   : > { %v3869_v29 = vpack.c.bf16 %v1678_v26, %v1676_v25 }
 0x2ef   : > { %v1728_v30 = vpack.c.bf16 %v1679_v28, %v1677_v27  ;;  %v1551_v31 = vpop.f32.mrb[20].mxu0 }
 0x2f0   : > { %v1552_v32 = vadd.f32 %v1551_v31, %v3837_v21  ;;  %v1553_v33 = vpop.f32.mrb[21].mxu0 }
 0x2f1   : > { %v1554_v35 = vadd.f32 %v1553_v33, %v3839_v22  ;;  %v1555_v36 = vpop.f32.mrb[22].mxu0  ;;  %3054 = vmatprep.mubr.bf16.mxu1 %v1728_v30 }
 0x2f2   : > { %v1556_v37 = vadd.f32 %v1555_v36, %v3837_v21  ;;  %v1557_v38 = vpop.f32.mrb[23].mxu0  ;;  %v1680_v40 = vmax.f32 %v1552_v32, 0.0 }
 0x2f3   : > { %v1558_v39 = vadd.f32 %v1557_v38, %v3839_v22  ;;  %v1681_v42 = vmax.f32 %v1554_v35, 0.0 }
 0x2f4   : > { %v1682_v41 = vmax.f32 %v1556_v37, 0.0 }
 0x2f5   : > { %v1683_v43 = vmax.f32 %v1558_v39, 0.0 }
 0x2f6   : > { %v3875_v44 = vpack.c.bf16 %v1682_v41, %v1680_v40 }
 0x2f7   : > { %v1729_v45 = vpack.c.bf16 %v1683_v43, %v1681_v42  ;;  %v1561_v46 = vpop.f32.mrb[24].mxu0 }
 0x2f8   : > { %v1562_v47 = vadd.f32 %v1561_v46, %v3837_v21  ;;  %v1563_v49 = vpop.f32.mrb[25].mxu0 }
 0x2f9   : > { %v1564_v50 = vadd.f32 %v1563_v49, %v3839_v22  ;;  %v1565_v52 = vpop.f32.mrb[26].mxu0  ;;  %3055 = vmatmul.mubr.bf16.gmra.mrb[4].mxu1 %v1729_v45 }
 0x2fa   : > { %v1566_v53 = vadd.f32 %v1565_v52, %v3837_v21  ;;  %v1567_v54 = vpop.f32.mrb[27].mxu0  ;;  %v1684_v56 = vmax.f32 %v1562_v47, 0.0 }
 0x2fb   : > { %v1568_v55 = vadd.f32 %v1567_v54, %v3839_v22  ;;  %v1685_v58 = vmax.f32 %v1564_v50, 0.0 }
 0x2fc   : > { %v1686_v57 = vmax.f32 %v1566_v53, 0.0 }
 0x2fd   : > { %v1687_v59 = vmax.f32 %v1568_v55, 0.0 }
 0x2fe   : > { %v3881_v60 = vpack.c.bf16 %v1686_v57, %v1684_v56 }
 0x2ff   : > { %v1730_v61 = vpack.c.bf16 %v1687_v59, %v1685_v58  ;;  %v1571_v62 = vpop.f32.mrb[28].mxu0 }
 0x300   : > { %v1572_v0 = vadd.f32 %v1571_v62, %v3837_v21  ;;  %v1573_v1 = vpop.f32.mrb[29].mxu0 }
 0x301   : > { %v1574_v2 = vadd.f32 %v1573_v1, %v3839_v22  ;;  %v1575_v3 = vpop.f32.mrb[30].mxu0  ;;  %3058 = vmatprep.mubr.bf16.mxu1 %v1730_v61 }
 0x302   : > { %v1576_v4 = vadd.f32 %v1575_v3, %v3837_v21  ;;  %v1577_v5 = vpop.f32.mrb[31].mxu0  ;;  %v1688_v7 = vmax.f32 %v1572_v0, 0.0 }
 0x303   : > { %v1578_v6 = vadd.f32 %v1577_v5, %v3839_v22  ;;  %v1689_v9 = vmax.f32 %v1574_v2, 0.0 }
 0x304   : > { %v1690_v8 = vmax.f32 %v1576_v4, 0.0 }
 0x305   : > { %v1691_v10 = vmax.f32 %v1578_v6, 0.0 }
 0x306   : > { %v3887_v11 = vpack.c.bf16 %v1690_v8, %v1688_v7 }
 0x307   : > { %v1731_v12 = vpack.c.bf16 %v1691_v10, %v1689_v9  ;;  %v1581_v14 = vpop.f32.mrb[32].mxu0 }
 0x308   : > { %v1582_v15 = vadd.f32 %v1581_v14, %v3837_v21  ;;  %v1583_v16 = vpop.f32.mrb[33].mxu0 }
 0x309   : > { %v1584_v18 = vadd.f32 %v1583_v16, %v3839_v22  ;;  %v1585_v19 = vpop.f32.mrb[34].mxu0  ;;  %3059 = vmatmul.mubr.bf16.gmra.mrb[8].mxu1 %v1731_v12 }
 0x30a   : > { %v1586_v20 = vadd.f32 %v1585_v19, %v3837_v21  ;;  %v1587_v51 = vpop.f32.mrb[35].mxu0  ;;  %v1692_v24 = vmax.f32 %v1582_v15, 0.0 }
 0x30b   : > { %v1588_v23 = vadd.f32 %v1587_v51, %v3839_v22  ;;  %v1693_v26 = vmax.f32 %v1584_v18, 0.0 }
 0x30c   : > { %v1694_v25 = vmax.f32 %v1586_v20, 0.0 }
 0x30d   : > { %v1695_v27 = vmax.f32 %v1588_v23, 0.0 }
 0x30e   : > { %v2478_v28 = vpack.c.bf16 %v1694_v25, %v1692_v24 }
 0x30f   : > { %v1732_v30 = vpack.c.bf16 %v1695_v27, %v1693_v26  ;;  %v1591_v31 = vpop.f32.mrb[36].mxu0 }
 0x310   : > { %v1592_v32 = vadd.f32 %v1591_v31, %v3837_v21  ;;  %v1593_v33 = vpop.f32.mrb[37].mxu0  ;;  %2966 = vmatprep.subr.bf16.mxu1 %v2478_v28 }
 0x311   : > { %v1594_v35 = vadd.f32 %v1593_v33, %v3839_v22  ;;  %v1595_v36 = vpop.f32.mrb[38].mxu0  ;;  %3062 = vmatprep.mubr.bf16.mxu1 %v1732_v30  ;;  %2967 = vmatpush3.bf16.msra.mxu1 %v3845_v34 }
 0x312   : > { %v1596_v37 = vadd.f32 %v1595_v36, %v3837_v21  ;;  %v1597_v38 = vpop.f32.mrb[39].mxu0  ;;  %v1696_v40 = vmax.f32 %v1592_v32, 0.0 }
 0x313   : > { %v1598_v39 = vadd.f32 %v1597_v38, %v3839_v22  ;;  %v1697_v42 = vmax.f32 %v1594_v35, 0.0 }
 0x314   : > { %v1698_v41 = vmax.f32 %v1596_v37, 0.0 }
 0x315   : > { %v1699_v43 = vmax.f32 %v1598_v39, 0.0 }
 0x316   : > { %v2479_v45 = vpack.c.bf16 %v1698_v41, %v1696_v40 }
 0x317   : > { %v1733_v46 = vpack.c.bf16 %v1699_v43, %v1697_v42  ;;  %v1601_v47 = vpop.f32.mrb[40].mxu0 }
 0x318   : > { %v1602_v49 = vadd.f32 %v1601_v47, %v3837_v21  ;;  %v1603_v50 = vpop.f32.mrb[41].mxu0  ;;  %2968 = vmatprep.subr.bf16.mxu1 %v2479_v45 }
 0x319   : > { %v1604_v52 = vadd.f32 %v1603_v50, %v3839_v22  ;;  %v1605_v53 = vpop.f32.mrb[42].mxu0  ;;  %3063 = vmatmul.mubr.bf16.gmra.mrb[12].mxu1 %v1733_v46 }
 0x31a   : > { %v1606_v34 = vadd.f32 %v1605_v53, %v3837_v21  ;;  %2969 = vmatpush3.bf16.msra.mxu1 %v3851_v48  ;;  %v1607_v54 = vpop.f32.mrb[43].mxu0  ;;  %v1700_v56 = vmax.f32 %v1602_v49, 0.0 }
 0x31b   : > { %v1608_v55 = vadd.f32 %v1607_v54, %v3839_v22  ;;  %v1701_v58 = vmax.f32 %v1604_v52, 0.0 }
 0x31c   : > { %v1702_v57 = vmax.f32 %v1606_v34, 0.0 }
 0x31d   : > { %v1703_v59 = vmax.f32 %v1608_v55, 0.0 }
 0x31e   : > { %v2480_v61 = vpack.c.bf16 %v1702_v57, %v1700_v56 }
 0x31f   : > { %v1734_v62 = vpack.c.bf16 %v1703_v59, %v1701_v58  ;;  %v1611_v0 = vpop.f32.mrb[44].mxu0 }
 0x320   : > { %v1612_v1 = vadd.f32 %v1611_v0, %v3837_v21  ;;  %v1613_v2 = vpop.f32.mrb[45].mxu0  ;;  %2970 = vmatprep.subr.bf16.mxu1 %v2480_v61 }
 0x321   : > { %v1614_v3 = vadd.f32 %v1613_v2, %v3839_v22  ;;  %v1615_v4 = vpop.f32.mrb[46].mxu0  ;;  %3066 = vmatprep.mubr.bf16.mxu1 %v1734_v62  ;;  %2971 = vmatpush3.bf16.msra.mxu1 %v3857_v63 }
 0x322   : > { %v1616_v48 = vadd.f32 %v1615_v4, %v3837_v21  ;;  %v1617_v5 = vpop.f32.mrb[47].mxu0  ;;  %v1704_v7 = vmax.f32 %v1612_v1, 0.0 }
 0x323   : > { %v1618_v6 = vadd.f32 %v1617_v5, %v3839_v22  ;;  %v1705_v9 = vmax.f32 %v1614_v3, 0.0 }
 0x324   : > { %v1706_v8 = vmax.f32 %v1616_v48, 0.0 }
 0x325   : > { %v1707_v10 = vmax.f32 %v1618_v6, 0.0 }
 0x326   : > { %v2481_v12 = vpack.c.bf16 %v1706_v8, %v1704_v7 }
 0x327   : > { %v1735_v14 = vpack.c.bf16 %v1707_v10, %v1705_v9  ;;  %v1621_v15 = vpop.f32.mrb[48].mxu0  ;;  %v3932_v10 = vld [vmem:[%s4333_s6] ss:$0 sm:$0xff] }
 0x328   : > { %v1622_v16 = vadd.f32 %v1621_v15, %v3837_v21  ;;  %v1623_v18 = vpop.f32.mrb[49].mxu0  ;;  %2972 = vmatprep.subr.bf16.mxu1 %v2481_v12 }
 0x329   : > { %v1624_v19 = vadd.f32 %v1623_v18, %v3839_v22  ;;  %v1625_v20 = vpop.f32.mrb[50].mxu0  ;;  %3067 = vmatmul.mubr.bf16.gmra.mrb[16].mxu1 %v1735_v14 }
 0x32a   : > { %v1626_v63 = vadd.f32 %v1625_v20, %v3837_v21  ;;  %2973 = vmatpush3.bf16.msra.mxu1 %v3863_v13  ;;  %v1627_v51 = vpop.f32.mrb[51].mxu0  ;;  %v1708_v24 = vmax.f32 %v1622_v16, 0.0 }
 0x32b   : > { %v1628_v23 = vadd.f32 %v1627_v51, %v3839_v22  ;;  %v1709_v26 = vmax.f32 %v1624_v19, 0.0 }
 0x32c   : > { %v1710_v25 = vmax.f32 %v1626_v63, 0.0 }
 0x32d   : > { %v1711_v27 = vmax.f32 %v1628_v23, 0.0 }
 0x32e   : > { %v2482_v28 = vpack.c.bf16 %v1710_v25, %v1708_v24 }
 0x32f   : > { %v1736_v30 = vpack.c.bf16 %v1711_v27, %v1709_v26  ;;  %v1631_v31 = vpop.f32.mrb[52].mxu0 }
 0x330   : > { %v1632_v32 = vadd.f32 %v1631_v31, %v3837_v21  ;;  %v1633_v33 = vpop.f32.mrb[53].mxu0  ;;  %2974 = vmatprep.subr.bf16.mxu1 %v2482_v28 }
 0x331   : > { %v1634_v35 = vadd.f32 %v1633_v33, %v3839_v22  ;;  %v1635_v36 = vpop.f32.mrb[54].mxu0  ;;  %3070 = vmatprep.mubr.bf16.mxu1 %v1736_v30  ;;  %2975 = vmatpush3.bf16.msra.mxu1 %v3869_v29 }
 0x332   : > { %v1636_v13 = vadd.f32 %v1635_v36, %v3837_v21  ;;  %v1637_v37 = vpop.f32.mrb[55].mxu0  ;;  %v1712_v39 = vmax.f32 %v1632_v32, 0.0 }
 0x333   : > { %v1638_v38 = vadd.f32 %v1637_v37, %v3839_v22  ;;  %v1713_v41 = vmax.f32 %v1634_v35, 0.0 }
 0x334   : > { %v1714_v40 = vmax.f32 %v1636_v13, 0.0 }
 0x335   : > { %v1715_v42 = vmax.f32 %v1638_v38, 0.0 }
 0x336   : > { %v2483_v43 = vpack.c.bf16 %v1714_v40, %v1712_v39 }
 0x337   : > { %v1737_v45 = vpack.c.bf16 %v1715_v42, %v1713_v41  ;;  %v1641_v46 = vpop.f32.mrb[56].mxu0 }
 0x338   : > { %v1642_v47 = vadd.f32 %v1641_v46, %v3837_v21  ;;  %v1643_v49 = vpop.f32.mrb[57].mxu0  ;;  %2976 = vmatprep.subr.bf16.mxu1 %v2483_v43 }
 0x339   : > { %v1644_v50 = vadd.f32 %v1643_v49, %v3839_v22  ;;  %v1645_v52 = vpop.f32.mrb[58].mxu0  ;;  %3071 = vmatmul.mubr.bf16.gmra.mrb[20].mxu1 %v1737_v45 }
 0x33a   : > { %v1646_v29 = vadd.f32 %v1645_v52, %v3837_v21  ;;  %2977 = vmatpush3.bf16.msra.mxu1 %v3875_v44  ;;  %v1647_v53 = vpop.f32.mrb[59].mxu0  ;;  %v1716_v54 = vmax.f32 %v1642_v47, 0.0 }
 0x33b   : > { %v1648_v34 = vadd.f32 %v1647_v53, %v3839_v22  ;;  %v1717_v56 = vmax.f32 %v1644_v50, 0.0 }
 0x33c   : > { %v1718_v55 = vmax.f32 %v1646_v29, 0.0 }
 0x33d   : > { %v1719_v57 = vmax.f32 %v1648_v34, 0.0 }
 0x33e   : > { %v2484_v58 = vpack.c.bf16 %v1718_v55, %v1716_v54 }
 0x33f   : > { %v1738_v59 = vpack.c.bf16 %v1719_v57, %v1717_v56  ;;  %v1651_v61 = vpop.f32.mrb[60].mxu0 }
 0x340   : > { %v1652_v62 = vadd.f32 %v1651_v61, %v3837_v21  ;;  %v1653_v0 = vpop.f32.mrb[61].mxu0  ;;  %2978 = vmatprep.subr.bf16.mxu1 %v2484_v58 }
 0x341   : > { %v1654_v1 = vadd.f32 %v1653_v0, %v3839_v22  ;;  %v1655_v2 = vpop.f32.mrb[62].mxu0  ;;  %3074 = vmatprep.mubr.bf16.mxu1 %v1738_v59  ;;  %2979 = vmatpush3.bf16.msra.mxu1 %v3881_v60 }
 0x342   : > { %v1656_v44 = vadd.f32 %v1655_v2, %v3837_v21  ;;  %v1657_v3 = vpop.f32.mrb[63].mxu0  ;;  %v1720_v48 = vmax.f32 %v1652_v62, 0.0 }
 0x343   : > { %v1658_v4 = vadd.f32 %v1657_v3, %v3839_v22  ;;  %v1721_v6 = vmax.f32 %v1654_v1, 0.0 }
 0x344   : > { %v1722_v5 = vmax.f32 %v1656_v44, 0.0 }
 0x345   : > { %v1723_v7 = vmax.f32 %v1658_v4, 0.0 }
 0x346   : > { %v2485_v8 = vpack.c.bf16 %v1722_v5, %v1720_v48 }
 0x347   : > { %v1739_v9 = vpack.c.bf16 %v1723_v7, %v1721_v6 }
 0x348   : > { %2980 = vmatprep.subr.bf16.mxu1 %v2485_v8 }
 0x349   : > { %3075 = vmatmul.mubr.bf16.gmra.mrb[24].mxu1 %v1739_v9 }
 0x34a   : > { %2981 = vmatpush3.bf16.msra.mxu1 %v3887_v11 }
 0x3ac   : > { %v3048_v60 = vpop.f32.mrb[64].mxu0 }
 0x3ad   : > { %v3935_v21 = vadd.f32 %v3048_v60, %v3932_v10  ;;  %v1845_v22 = vpop.f32.mrb[65].mxu0 }
 0x3ae   : > { %v3938_v12 = vadd.f32 %v3932_v10, %v1845_v22  ;;  %v3049_v14 = vpop.f32.mrb[66].mxu0 }
 0x3af   : > { %1976 = vmax.xlane.f32.xlu1 %v3935_v21  ;;  %v1848_v15 = vpop.f32.mrb[67].mxu0  ;;  %v3943_v11 = vadd.f32 %v3049_v14, %v3932_v10 }
 0x3b0   : > { %1972 = vmax.xlane.f32.xlu0 %v3938_v12  ;;  %v3947_v16 = vadd.f32 %v3932_v10, %v1848_v15 }
 0x3b4   : > { %1978 = vmax.xlane.f32.xlu0 %v3943_v11 }
 0x3b8   : > { %1974 = vmax.xlane.f32.xlu0 %v3947_v16 }
 0x3bc   : > { %v3052_v18 = vpop.f32.mrb[0].mxu1 }
 0x3bd   : > { %v3951_v19 = vadd.f32 %v3052_v18, %v3932_v10  ;;  %v1861_v20 = vpop.f32.mrb[1].mxu1 }
 0x3be   : > { %v3053_v63 = vpop.f32.mrb[2].mxu1  ;;  %v3958_v24 = vadd.f32 %v3932_v10, %v1861_v20 }
 0x3bf   : > { %v3954_v51 = vadd.f32 %v3053_v63, %v3932_v10  ;;  %v1864_v23 = vpop.f32.mrb[3].mxu1  ;;  %1984 = vmax.xlane.f32.xlu1 %v3951_v19 }
 0x3c0   : > { %v3962_v25 = vadd.f32 %v3932_v10, %v1864_v23 }
 0x3c1   : > { %1986 = vmax.xlane.f32.xlu0 %v3954_v51 }
 0x3c3   : > { %1980 = vmax.xlane.f32.xlu1 %v3958_v24 }
 0x3c5   : > { %1982 = vmax.xlane.f32.xlu0 %v3962_v25 }
 0x3cc   : > { %v3056_v26 = vpop.f32.mrb[4].mxu1 }
 0x3cd   : > { %v3967_v27 = vadd.f32 %v3056_v26, %v3932_v10  ;;  %v1877_v28 = vpop.f32.mrb[5].mxu1 }
 0x3ce   : > { %v3057_v30 = vpop.f32.mrb[6].mxu1  ;;  %v3974_v33 = vadd.f32 %v3932_v10, %v1877_v28 }
 0x3cf   : > { %v3970_v31 = vadd.f32 %v3057_v30, %v3932_v10  ;;  %v1880_v32 = vpop.f32.mrb[7].mxu1  ;;  %1992 = vmax.xlane.f32.xlu1 %v3967_v27 }
 0x3d0   : > { %v3978_v35 = vadd.f32 %v3932_v10, %v1880_v32 }
 0x3d1   : > { %1994 = vmax.xlane.f32.xlu0 %v3970_v31 }
 0x3d3   : > { %1988 = vmax.xlane.f32.xlu1 %v3974_v33 }
 0x3d5   : > { %1990 = vmax.xlane.f32.xlu0 %v3978_v35 }
 0x3dc   : > { %v3060_v36 = vpop.f32.mrb[8].mxu1 }
 0x3dd   : > { %v1893_v13 = vpop.f32.mrb[9].mxu1  ;;  %v4054_v60 = vadd.f32 %v3060_v36, %v3932_v10 }
 0x3de   : > { %v3983_v37 = vadd.f32 %v3932_v10, %v1893_v13  ;;  %v3061_v38 = vpop.f32.mrb[10].mxu1 }
 0x3df   : > { %v1896_v39 = vpop.f32.mrb[11].mxu1  ;;  %v4058_v22 = vadd.f32 %v3061_v38, %v3932_v10 }
 0x3e0   : > { %v3986_v40 = vadd.f32 %v3932_v10, %v1896_v39  ;;  %1996 = vmax.xlane.f32.xlu1 %v3983_v37 }
 0x3e2   : > { %1998 = vmax.xlane.f32.xlu0 %v3986_v40 }
 0x3ec   : > { %v3064_v41 = vpop.f32.mrb[12].mxu1 }
 0x3ed   : > { %v3991_v42 = vadd.f32 %v3064_v41, %v3932_v10  ;;  %v1909_v43 = vpop.f32.mrb[13].mxu1 }
 0x3ee   : > { %v3994_v45 = vadd.f32 %v3932_v10, %v1909_v43  ;;  %v3065_v46 = vpop.f32.mrb[14].mxu1 }
 0x3ef   : > { %v1912_v47 = vpop.f32.mrb[15].mxu1  ;;  %2008 = vmax.xlane.f32.xlu1 %v3991_v42  ;;  %v4002_v50 = vadd.f32 %v3065_v46, %v3932_v10 }
 0x3f0   : > { %v3998_v49 = vadd.f32 %v3932_v10, %v1912_v47  ;;  %2004 = vmax.xlane.f32.xlu0 %v3994_v45 }
 0x3f3   : > { %2006 = vmax.xlane.f32.xlu1 %v3998_v49 }
 0x3f4   : > { %2010 = vmax.xlane.f32.xlu0 %v4002_v50 }
 0x3fc   : > { %v3068_v52 = vpop.f32.mrb[16].mxu1 }
 0x3fd   : > { %v4007_v29 = vadd.f32 %v3068_v52, %v3932_v10  ;;  %v1925_v53 = vpop.f32.mrb[17].mxu1 }
 0x3fe   : > { %v3069_v34 = vpop.f32.mrb[18].mxu1  ;;  %v4014_v56 = vadd.f32 %v3932_v10, %v1925_v53 }
 0x3ff   : > { %v4010_v54 = vadd.f32 %v3069_v34, %v3932_v10  ;;  %v1928_v55 = vpop.f32.mrb[19].mxu1  ;;  %2016 = vmax.xlane.f32.xlu1 %v4007_v29 }
 0x400   : > { %v4018_v57 = vadd.f32 %v3932_v10, %v1928_v55 }
 0x401   : > { %2018 = vmax.xlane.f32.xlu0 %v4010_v54 }
 0x403   : > { %2012 = vmax.xlane.f32.xlu1 %v4014_v56 }
 0x405   : > { %2014 = vmax.xlane.f32.xlu0 %v4018_v57 }
 0x40c   : > { %v3072_v58 = vpop.f32.mrb[20].mxu1 }
 0x40d   : > { %v4023_v59 = vadd.f32 %v3072_v58, %v3932_v10  ;;  %v1941_v61 = vpop.f32.mrb[21].mxu1 }
 0x40e   : > { %v3073_v62 = vpop.f32.mrb[22].mxu1  ;;  %v4030_v2 = vadd.f32 %v3932_v10, %v1941_v61 }
 0x40f   : > { %v4026_v0 = vadd.f32 %v3073_v62, %v3932_v10  ;;  %v1944_v1 = vpop.f32.mrb[23].mxu1  ;;  %2024 = vmax.xlane.f32.xlu1 %v4023_v59 }
 0x410   : > { %v4034_v44 = vadd.f32 %v3932_v10, %v1944_v1 }
 0x411   : > { %2026 = vmax.xlane.f32.xlu0 %v4026_v0 }
 0x413   : > { %2020 = vmax.xlane.f32.xlu1 %v4030_v2 }
 0x415   : > { %2022 = vmax.xlane.f32.xlu0 %v4034_v44 }
 0x41c   : > { %v3076_v3 = vpop.f32.mrb[24].mxu1 }
 0x41d   : > { %v4039_v4 = vadd.f32 %v3076_v3, %v3932_v10  ;;  %v1957_v48 = vpop.f32.mrb[25].mxu1 }
 0x41e   : > { %v3077_v5 = vpop.f32.mrb[26].mxu1  ;;  %v4046_v8 = vadd.f32 %v3932_v10, %v1957_v48 }
 0x41f   : > { %v4042_v6 = vadd.f32 %v3077_v5, %v3932_v10  ;;  %v1960_v7 = vpop.f32.mrb[27].mxu1  ;;  %2032 = vmax.xlane.f32.xlu1 %v4039_v4 }
 0x420   : > { %v4050_v9 = vadd.f32 %v3932_v10, %v1960_v7 }
 0x421   : > { %2034 = vmax.xlane.f32.xlu0 %v4042_v6 }
 0x423   : > { %2028 = vmax.xlane.f32.xlu1 %v4046_v8 }
 0x425   : > { %2030 = vmax.xlane.f32.xlu0 %v4050_v9 }
 0x427   : > { %2000 = vmax.xlane.f32.xlu1 %v4054_v60 }
 0x429   : > { %2002 = vmax.xlane.f32.xlu0 %v4058_v22 }
 0x43c   : > { %v1977_v14 = vpop.xlane.xlu1 %1976 }
 0x43d   : > { %v2038_v15 = vsub.f32 %v3935_v21, %v1977_v14  ;;  %v1973_v18 = vpop.xlane.xlu0 %1972 }
 0x43e   : > { %v2036_v20 = vsub.f32 %v3938_v12, %v1973_v18 }
 0x43f   : > { %v2072_v63 = vmul.f32 1.442695, %v2038_v15 }
 0x440   : > { %v2068_v23 = vmul.f32 1.442695, %v2036_v20 }
 0x441   : > { %3244 = vpow2.f32 %v2072_v63  ;;  %v1979_v26 = vpop.xlane.xlu0 %1978 }
 0x442   : > { %v2039_v28 = vsub.f32 %v3943_v11, %v1979_v26  ;;  %3246 = vpow2.f32 %v2068_v23 }
 0x444   : > { %v2074_v30 = vmul.f32 1.442695, %v2039_v28 }
 0x445   : > { %v1975_v10 = vpop.xlane.xlu0 %1974 }
 0x446   : > { %3248 = vpow2.f32 %v2074_v30  ;;  %v2037_v32 = vsub.f32 %v3947_v16, %v1975_v10 }
 0x448   : > { %v2070_v36 = vmul.f32 1.442695, %v2037_v32 }
 0x44a   : > { %3250 = vpow2.f32 %v2070_v36 }
 0x44b   : > { %v4066_v13 = vpop.eup %3244 }
 0x44c   : > { %2136 = vadd.xlane.f32.xlu1 %v4066_v13  ;;  %v1985_v21 = vpop.xlane.xlu1 %1984  ;;  %v4070_v39 = vpop.eup %3246 }
 0x44d   : > { %v2042_v12 = vsub.f32 %v3951_v19, %v1985_v21 }
 0x44e   : > { %v1987_v38 = vpop.xlane.xlu0 %1986 }
 0x44f   : > { %v2080_v41 = vmul.f32 1.442695, %v2042_v12  ;;  %v2043_v11 = vsub.f32 %v3954_v51, %v1987_v38 }
 0x450   : > { %v4073_v43 = vpop.eup %3248  ;;  %v1981_v46 = vpop.xlane.xlu1 %1980  ;;  %2132 = vadd.xlane.f32.xlu1 %v4070_v39 }
 0x451   : > { %3252 = vpow2.f32 %v2080_v41  ;;  %v2082_v16 = vmul.f32 1.442695, %v2043_v11  ;;  %v2040_v47 = vsub.f32 %v3958_v24, %v1981_v46  ;;  %2138 = vadd.xlane.f32.xlu0 %v4073_v43 }
 0x452   : > { %v1983_v52 = vpop.xlane.xlu0 %1982 }
 0x453   : > { %3254 = vpow2.f32 %v2082_v16  ;;  %v2076_v19 = vmul.f32 1.442695, %v2040_v47  ;;  %v2041_v53 = vsub.f32 %v3962_v25, %v1983_v52 }
 0x454   : > { %v4079_v34 = vpop.eup %3250 }
 0x455   : > { %3256 = vpow2.f32 %v2076_v19  ;;  %v2078_v51 = vmul.f32 1.442695, %v2041_v53  ;;  %2134 = vadd.xlane.f32.xlu0 %v4079_v34 }
 0x457   : > { %3258 = vpow2.f32 %v2078_v51 }
 0x45b   : > { %v4082_v55 = vpop.eup %3252 }
 0x45c   : > { %v1993_v58 = vpop.xlane.xlu1 %1992  ;;  %2144 = vadd.xlane.f32.xlu1 %v4082_v55 }
 0x45d   : > { %v4085_v24 = vpop.eup %3254  ;;  %v2046_v61 = vsub.f32 %v3967_v27, %v1993_v58 }
 0x45e   : > { %2146 = vadd.xlane.f32.xlu0 %v4085_v24  ;;  %v1995_v62 = vpop.xlane.xlu0 %1994 }
 0x45f   : > { %v4089_v25 = vpop.eup %3256  ;;  %v2088_v1 = vmul.f32 1.442695, %v2046_v61  ;;  %v2047_v3 = vsub.f32 %v3970_v31, %v1995_v62 }
 0x460   : > { %v1989_v48 = vpop.xlane.xlu1 %1988  ;;  %2140 = vadd.xlane.f32.xlu1 %v4089_v25 }
 0x461   : > { %v4093_v5 = vpop.eup %3258  ;;  %3260 = vpow2.f32 %v2088_v1  ;;  %v2090_v7 = vmul.f32 1.442695, %v2047_v3  ;;  %v2044_v14 = vsub.f32 %v3974_v33, %v1989_v48 }
 0x462   : > { %2142 = vadd.xlane.f32.xlu0 %v4093_v5  ;;  %v1991_v27 = vpop.xlane.xlu0 %1990 }
 0x463   : > { %3262 = vpow2.f32 %v2090_v7  ;;  %v2084_v15 = vmul.f32 1.442695, %v2044_v14  ;;  %v2045_v18 = vsub.f32 %v3978_v35, %v1991_v27 }
 0x465   : > { %3264 = vpow2.f32 %v2084_v15  ;;  %v2086_v20 = vmul.f32 1.442695, %v2045_v18 }
 0x467   : > { %3266 = vpow2.f32 %v2086_v20 }
 0x46b   : > { %v4098_v31 = vpop.eup %3260 }
 0x46c   : > { %2152 = vadd.xlane.f32.xlu1 %v4098_v31 }
 0x46d   : > { %v4101_v63 = vpop.eup %3262  ;;  %v1997_v23 = vpop.xlane.xlu1 %1996 }
 0x46e   : > { %v2048_v26 = vsub.f32 %v3983_v37, %v1997_v23  ;;  %2154 = vadd.xlane.f32.xlu0 %v4101_v63 }
 0x46f   : > { %v4105_v33 = vpop.eup %3264  ;;  %v1999_v28 = vpop.xlane.xlu0 %1998 }
 0x470   : > { %v2092_v30 = vmul.f32 1.442695, %v2048_v26  ;;  %v2049_v35 = vsub.f32 %v3986_v40, %v1999_v28  ;;  %2148 = vadd.xlane.f32.xlu1 %v4105_v33 }
 0x471   : > { %v4109_v10 = vpop.eup %3266 }
 0x472   : > { %3268 = vpow2.f32 %v2092_v30  ;;  %v2094_v32 = vmul.f32 1.442695, %v2049_v35  ;;  %2150 = vadd.xlane.f32.xlu0 %v4109_v10 }
 0x474   : > { %3270 = vpow2.f32 %v2094_v32 }
 0x47c   : > { %v4112_v36 = vpop.eup %3268  ;;  %v2009_v37 = vpop.xlane.xlu1 %2008 }
 0x47d   : > { %v2054_v21 = vsub.f32 %v3991_v42, %v2009_v37  ;;  %2156 = vadd.xlane.f32.xlu1 %v4112_v36  ;;  %v2005_v12 = vpop.xlane.xlu0 %2004 }
 0x47e   : > { %v4116_v38 = vpop.eup %3270  ;;  %v2052_v40 = vsub.f32 %v3994_v45, %v2005_v12 }
 0x47f   : > { %v2104_v41 = vmul.f32 1.442695, %v2054_v21  ;;  %2158 = vadd.xlane.f32.xlu0 %v4116_v38 }
 0x480   : > { %v2007_v11 = vpop.xlane.xlu1 %2006  ;;  %v2100_v46 = vmul.f32 1.442695, %v2052_v40 }
 0x481   : > { %3272 = vpow2.f32 %v2104_v41  ;;  %v2011_v16 = vpop.xlane.xlu0 %2010  ;;  %v2053_v47 = vsub.f32 %v3998_v49, %v2007_v11 }
 0x482   : > { %v2055_v52 = vsub.f32 %v4002_v50, %v2011_v16  ;;  %3274 = vpow2.f32 %v2100_v46 }
 0x483   : > { %v2102_v42 = vmul.f32 1.442695, %v2053_v47 }
 0x484   : > { %v2106_v19 = vmul.f32 1.442695, %v2055_v52 }
 0x486   : > { %3276 = vpow2.f32 %v2106_v19 }
 0x487   : > { %3278 = vpow2.f32 %v2102_v42 }
 0x48b   : > { %v4122_v53 = vpop.eup %3272 }
 0x48c   : > { %v2017_v51 = vpop.xlane.xlu1 %2016  ;;  %2168 = vadd.xlane.f32.xlu1 %v4122_v53  ;;  %v4126_v61 = vpop.eup %3274 }
 0x48d   : > { %v2058_v45 = vsub.f32 %v4007_v29, %v2017_v51 }
 0x48e   : > { %v2019_v58 = vpop.xlane.xlu0 %2018 }
 0x48f   : > { %v2112_v62 = vmul.f32 1.442695, %v2058_v45  ;;  %v2059_v49 = vsub.f32 %v4010_v54, %v2019_v58 }
 0x490   : > { %v4129_v1 = vpop.eup %3276  ;;  %v2013_v50 = vpop.xlane.xlu1 %2012  ;;  %2164 = vadd.xlane.f32.xlu1 %v4126_v61 }
 0x491   : > { %3280 = vpow2.f32 %v2112_v62  ;;  %v2114_v3 = vmul.f32 1.442695, %v2059_v49  ;;  %v2056_v48 = vsub.f32 %v4014_v56, %v2013_v50  ;;  %2170 = vadd.xlane.f32.xlu0 %v4129_v1  ;;  %v4135_v27 = vpop.eup %3278 }
 0x492   : > { %v2015_v7 = vpop.xlane.xlu0 %2014 }
 0x493   : > { %3282 = vpow2.f32 %v2114_v3  ;;  %v2108_v29 = vmul.f32 1.442695, %v2056_v48  ;;  %v2057_v14 = vsub.f32 %v4018_v57, %v2015_v7 }
 0x495   : > { %3284 = vpow2.f32 %v2108_v29  ;;  %v2110_v54 = vmul.f32 1.442695, %v2057_v14  ;;  %2166 = vadd.xlane.f32.xlu0 %v4135_v27 }
 0x497   : > { %3286 = vpow2.f32 %v2110_v54 }
 0x49b   : > { %v4138_v15 = vpop.eup %3280 }
 0x49c   : > { %v2025_v18 = vpop.xlane.xlu1 %2024  ;;  %2176 = vadd.xlane.f32.xlu1 %v4138_v15 }
 0x49d   : > { %v4141_v56 = vpop.eup %3282  ;;  %v2062_v20 = vsub.f32 %v4023_v59, %v2025_v18 }
 0x49e   : > { %2178 = vadd.xlane.f32.xlu0 %v4141_v56  ;;  %v2027_v23 = vpop.xlane.xlu0 %2026 }
 0x49f   : > { %v4145_v57 = vpop.eup %3284  ;;  %v2120_v26 = vmul.f32 1.442695, %v2062_v20  ;;  %v2063_v28 = vsub.f32 %v4026_v0, %v2027_v23 }
 0x4a0   : > { %v2021_v30 = vpop.xlane.xlu1 %2020  ;;  %2172 = vadd.xlane.f32.xlu1 %v4145_v57 }
 0x4a1   : > { %v4149_v35 = vpop.eup %3286  ;;  %3288 = vpow2.f32 %v2120_v26  ;;  %v2122_v32 = vmul.f32 1.442695, %v2063_v28  ;;  %v2060_v37 = vsub.f32 %v4030_v2, %v2021_v30  ;;  %v2262_v26 = vadd.s32 8, %v3830_v17 }
 0x4a2   : > { %2174 = vadd.xlane.f32.xlu0 %v4149_v35  ;;  %v2023_v59 = vpop.xlane.xlu0 %2022  ;;  %v2264_v28 = vadd.s32 24, %v3830_v17  ;;  %v4194_v30 = vstv %s2747_s17 }
 0x4a3   : > { %3290 = vpow2.f32 %v2122_v32  ;;  %v2116_v21 = vmul.f32 1.442695, %v2060_v37  ;;  %v2061_v12 = vsub.f32 %v4034_v44, %v2023_v59  ;;  %v2294_v59 = vadd.s32 %v4194_v30, %v3830_v17 }
 0x4a5   : > { %3292 = vpow2.f32 %v2116_v21  ;;  %v2118_v40 = vmul.f32 1.442695, %v2061_v12  ;;  %v2295_v21 = vadd.s32 %v4194_v30, %v2262_v26  ;;  %v2263_v12 = vadd.s32 16, %v3830_v17 }
 0x4a6   : > { %vm2326_vm3 = vcmp.lt.s32.totalorder %v2294_v59, 512 }
 0x4a7   : > { %3294 = vpow2.f32 %v2118_v40  ;;  %vm2327_vm4 = vcmp.lt.s32.totalorder %v2295_v21, 512 }
 0x4ab   : > { %v4154_v0 = vpop.eup %3288 }
 0x4ac   : > { %v2033_v41 = vpop.xlane.xlu1 %2032  ;;  %2184 = vadd.xlane.f32.xlu1 %v4154_v0 }
 0x4ad   : > { %v4157_v11 = vpop.eup %3290  ;;  %v2066_v46 = vsub.f32 %v4039_v4, %v2033_v41 }
 0x4ae   : > { %2186 = vadd.xlane.f32.xlu0 %v4157_v11  ;;  %v2035_v2 = vpop.xlane.xlu0 %2034 }
 0x4af   : > { %v4161_v16 = vpop.eup %3292  ;;  %v2128_v47 = vmul.f32 1.442695, %v2066_v46  ;;  %v2067_v44 = vsub.f32 %v4042_v6, %v2035_v2  ;;  %v2297_v46 = vadd.s32 %v4194_v30, %v2264_v28 }
 0x4b0   : > { %v2029_v52 = vpop.xlane.xlu1 %2028  ;;  %2180 = vadd.xlane.f32.xlu1 %v4161_v16 }
 0x4b1   : > { %v4165_v19 = vpop.eup %3294  ;;  %3296 = vpow2.f32 %v2128_v47  ;;  %v2130_v42 = vmul.f32 1.442695, %v2067_v44  ;;  %v2064_v51 = vsub.f32 %v4046_v8, %v2029_v52  ;;  %vm2329_vm5 = vcmp.lt.s32.totalorder %v2297_v46, 512 }
 0x4b2   : > { %2182 = vadd.xlane.f32.xlu0 %v4165_v19  ;;  %v2031_v4 = vpop.xlane.xlu0 %2030 }
 0x4b3   : > { %3298 = vpow2.f32 %v2130_v42  ;;  %v2124_v45 = vmul.f32 1.442695, %v2064_v51  ;;  %v2065_v58 = vsub.f32 %v4050_v9, %v2031_v4  ;;  %v2296_v42 = vadd.s32 %v4194_v30, %v2263_v12 }
 0x4b4   : > { %v2001_v62 = vpop.xlane.xlu1 %2000 }
 0x4b5   : > { %3300 = vpow2.f32 %v2124_v45  ;;  %v2126_v49 = vmul.f32 1.442695, %v2065_v58  ;;  %v2050_v6 = vsub.f32 %v4054_v60, %v2001_v62  ;;  %vm2328_vm6 = vcmp.lt.s32.totalorder %v2296_v42, 512 }
 0x4b6   : > { %v2003_v50 = vpop.xlane.xlu0 %2002 }
 0x4b7   : > { %3302 = vpow2.f32 %v2126_v49  ;;  %v2096_v3 = vmul.f32 1.442695, %v2050_v6  ;;  %v2051_v48 = vsub.f32 %v4058_v22, %v2003_v50  ;;  %v2265_v50 = vadd.s32 32, %v3830_v17 }
 0x4b9   : > { %3304 = vpow2.f32 %v2096_v3  ;;  %v2098_v7 = vmul.f32 1.442695, %v2051_v48  ;;  %v2266_v3 = vadd.s32 40, %v3830_v17 }
 0x4bb   : > { %v4172_v8 = vpop.eup %3296  ;;  %3306 = vpow2.f32 %v2098_v7  ;;  %v2298_v7 = vadd.s32 %v4194_v30, %v2265_v50 }
 0x4bc   : > { %2192 = vadd.xlane.f32.xlu1 %v4172_v8 }
 0x4bd   : > { %v4175_v29 = vpop.eup %3298  ;;  %vm2330_vm7 = vcmp.lt.s32.totalorder %v2298_v7, 512 }
 0x4be   : > { %2194 = vadd.xlane.f32.xlu0 %v4175_v29 }
 0x4bf   : > { %v4178_v9 = vpop.eup %3300 }
 0x4c0   : > { %2188 = vadd.xlane.f32.xlu1 %v4178_v9 }
 0x4c1   : > { %v4181_v60 = vpop.eup %3302 }
 0x4c2   : > { %2190 = vadd.xlane.f32.xlu0 %v4181_v60 }
 0x4c3   : > { %v4184_v22 = vpop.eup %3304 }
 0x4c4   : > { %2160 = vadd.xlane.f32.xlu1 %v4184_v22 }
 0x4c5   : > { %v4187_v14 = vpop.eup %3306 }
 0x4c6   : > { %2162 = vadd.xlane.f32.xlu0 %v4187_v14 }
 0x4d9   : > { %v2137_v54 = vpop.xlane.xlu1 %2136 }
 0x4dd   : > { %v2133_v18 = vpop.xlane.xlu1 %2132 }
 0x4de   : > { %v2139_v20 = vpop.xlane.xlu0 %2138  ;;  %3308 = vrcp.f32 %v2133_v18  ;;  %v2267_v18 = vadd.s32 48, %v3830_v17 }
 0x4df   : > { %3310 = vrcp.f32 %v2139_v20 }
 0x4e0   : > { %3312 = vrcp.f32 %v2137_v54  ;;  %v2299_v54 = vadd.s32 %v4194_v30, %v2266_v3  ;;  %v2300_v59 = vadd.s32 %v4194_v30, %v2267_v18 }
 0x4e2   : > { %v2135_v23 = vpop.xlane.xlu0 %2134  ;;  %vm2331_vm8 = vcmp.lt.s32.totalorder %v2299_v54, 512  ;;  %vm2332_vm10 = vcmp.lt.s32.totalorder %v2300_v59, 512 }
 0x4e3   : > { %3314 = vrcp.f32 %v2135_v23 }
 0x4e8   : > { %v3309_v32 = vpop.eup %3308 }
 0x4e9   : > { %v2145_v37 = vpop.xlane.xlu1 %2144  ;;  %v3311_v40 = vpop.eup %3310  ;;  %v2197_v47 = vmul.f32 %v3309_v32, %v4070_v39 }
 0x4ea   : > { %v3313_v2 = vpop.eup %3312  ;;  %v2203_v4 = vmul.f32 %v3311_v40, %v4073_v43 }
 0x4eb   : > { %v2147_v41 = vpop.xlane.xlu0 %2146  ;;  %v2422_v58 = vsel %vm2326_vm3, %v2197_v47, 0.0  ;;  %v2201_v39 = vmul.f32 %v3313_v2, %v4066_v13 }
 0x4ec   : > { %3316 = vrcp.f32 %v2147_v41  ;;  %v2425_v6 = vsel %vm2329_vm5, %v2203_v4, 0.0  ;;  %v2272_v4 = vadd.s32 88, %v3830_v17 }
 0x4ed   : > { %v3315_v44 = vpop.eup %3314  ;;  %v2141_v52 = vpop.xlane.xlu1 %2140  ;;  %v2424_v48 = vsel %vm2328_vm6, %v2201_v39, 0.0 }
 0x4ee   : > { %3318 = vrcp.f32 %v2141_v52  ;;  %v2199_v51 = vmul.f32 %v3315_v44, %v4079_v34  ;;  %v2268_v34 = vadd.s32 56, %v3830_v17  ;;  %v2455_v43 = vpack.c.bf16 %v2425_v6, %v2424_v48 }
 0x4ef   : > { %3320 = vrcp.f32 %v2145_v37  ;;  %v2143_v45 = vpop.xlane.xlu0 %2142 }
 0x4f0   : > { %3322 = vrcp.f32 %v2143_v45  ;;  %v2423_v62 = vsel %vm2327_vm4, %v2199_v51, 0.0  ;;  %v2301_v23 = vadd.s32 %v4194_v30, %v2268_v34 }
 0x4f1   : > { %v2454_v49 = vpack.c.bf16 %v2423_v62, %v2422_v58  ;;  %v2271_v58 = vadd.s32 80, %v3830_v17 }
 0x4f2   : > { %vm2333_vm9 = vcmp.lt.s32.totalorder %v2301_v23, 512 }
 0x4f3   : > { %2486 = vxpose.xlu0.c.b16.start [1/8] %v2454_v49, 128  ;;  %v2305_v49 = vadd.s32 %v4194_v30, %v2272_v4  ;;  %v2304_v34 = vadd.s32 %v4194_v30, %v2271_v58  ;;  %v2279_v4 = vadd.s32 144, %v3830_v17 }
 0x4f5   : > { %vm2337_vm13 = vcmp.lt.s32.totalorder %v2305_v49, 512  ;;  %vm2336_vm14 = vcmp.lt.s32.totalorder %v2304_v34, 512 }
 0x4f6   : > { %v3317_v20 = vpop.eup %3316 }
 0x4f7   : > { %2487 = vxpose.xlu0.c.b16.cont [2/8] %v2455_v43, 128  ;;  %v2211_v40 = vmul.f32 %v3317_v20, %v4085_v24  ;;  %v2270_v24 = vadd.s32 72, %v3830_v17 }
 0x4f8   : > { %v3319_v13 = vpop.eup %3318 }
 0x4f9   : > { %v3321_v26 = vpop.eup %3320  ;;  %v2153_v28 = vpop.xlane.xlu1 %2152  ;;  %v2205_v32 = vmul.f32 %v3319_v13, %v4089_v25  ;;  %v2429_v52 = vsel %vm2333_vm9, %v2211_v40, 0.0 }
 0x4fa   : > { %v3323_v37 = vpop.eup %3322  ;;  %v2209_v47 = vmul.f32 %v3321_v26, %v4082_v55  ;;  %v2303_v55 = vadd.s32 %v4194_v30, %v2270_v24  ;;  %v2273_v26 = vadd.s32 96, %v3830_v17 }
 0x4fb   : > { %v2155_v21 = vpop.xlane.xlu0 %2154  ;;  %v2207_v12 = vmul.f32 %v3323_v37, %v4093_v5  ;;  %v2426_v46 = vsel %vm2330_vm7, %v2205_v32, 0.0  ;;  %v2269_v5 = vadd.s32 64, %v3830_v17 }
 0x4fc   : > { %3324 = vrcp.f32 %v2155_v21  ;;  %v2428_v42 = vsel %vm2332_vm10, %v2209_v47, 0.0  ;;  %vm2335_vm12 = vcmp.lt.s32.totalorder %v2303_v55, 512 }
 0x4fd   : > { %v2149_v41 = vpop.xlane.xlu1 %2148  ;;  %v2427_v2 = vsel %vm2331_vm8, %v2207_v12, 0.0  ;;  %v2457_v51 = vpack.c.bf16 %v2429_v52, %v2428_v42  ;;  %v2302_v45 = vadd.s32 %v4194_v30, %v2269_v5  ;;  %v2277_v52 = vadd.s32 128, %v3830_v17 }
 0x4fe   : > { %3326 = vrcp.f32 %v2149_v41  ;;  %v2456_v44 = vpack.c.bf16 %v2427_v2, %v2426_v46  ;;  %v2280_v42 = vadd.s32 152, %v3830_v17 }
 0x4ff   : > { %3328 = vrcp.f32 %v2153_v28  ;;  %v2151_v25 = vpop.xlane.xlu0 %2150  ;;  %vm2334_vm11 = vcmp.lt.s32.totalorder %v2302_v45, 512  ;;  %v2274_v28 = vadd.s32 104, %v3830_v17  ;;  %v2310_v5 = vadd.s32 %v4194_v30, %v2277_v52 }
 0x500   : > { %3330 = vrcp.f32 %v2151_v25  ;;  %2488 = vxpose.xlu0.c.b16.cont [3/8] %v2456_v44, 128  ;;  %v2313_v58 = vadd.s32 %v4194_v30, %v2280_v42 }
 0x501   : > { %vm2342_vm1 = vcmp.lt.s32.totalorder %v2310_v5, 512  ;;  %v2287_v5 = vadd.s32 208, %v3830_v17 }
 0x502   : > { %vm2345_vm3 = vcmp.lt.s32.totalorder %v2313_v58, 512 }
 0x504   : > { %2489 = vxpose.xlu0.c.b16.cont [4/8] %v2457_v51, 128 }
 0x506   : > { %v3325_v62 = vpop.eup %3324 }
 0x507   : > { %v2219_v7 = vmul.f32 %v3325_v62, %v4101_v63  ;;  %v2307_v63 = vadd.s32 %v4194_v30, %v2274_v28  ;;  %v2283_v28 = vadd.s32 176, %v3830_v17 }
 0x508   : > { %v3327_v39 = vpop.eup %3326 }
 0x509   : > { %v3329_v6 = vpop.eup %3328  ;;  %v2213_v50 = vmul.f32 %v3327_v39, %v4105_v33  ;;  %v2433_v33 = vsel %vm2337_vm13, %v2219_v7, 0.0  ;;  %vm2339_vm0 = vcmp.lt.s32.totalorder %v2307_v63, 512 }
 0x50a   : > { %v3331_v3 = vpop.eup %3330  ;;  %v2157_v48 = vpop.xlane.xlu1 %2156  ;;  %v2217_v13 = vmul.f32 %v3329_v6, %v4098_v31 }
 0x50b   : > { %3332 = vrcp.f32 %v2157_v48  ;;  %v2215_v43 = vmul.f32 %v3331_v3, %v4109_v10  ;;  %v2430_v18 = vsel %vm2334_vm11, %v2213_v50, 0.0  ;;  %v2306_v10 = vadd.s32 %v4194_v30, %v2273_v26 }
 0x50c   : > { %v2159_v54 = vpop.xlane.xlu0 %2158  ;;  %v2432_v32 = vsel %vm2336_vm14, %v2217_v13, 0.0  ;;  %v2312_v50 = vadd.s32 %v4194_v30, %v2279_v4  ;;  %v2282_v13 = vadd.s32 168, %v3830_v17 }
 0x50d   : > { %3334 = vrcp.f32 %v2159_v54  ;;  %v2431_v20 = vsel %vm2335_vm12, %v2215_v43, 0.0  ;;  %v2459_v37 = vpack.c.bf16 %v2433_v33, %v2432_v32  ;;  %vm2338_vm15 = vcmp.lt.s32.totalorder %v2306_v10, 512 }
 0x50e   : > { %v2458_v23 = vpack.c.bf16 %v2431_v20, %v2430_v18  ;;  %vm2344_vm4 = vcmp.lt.s32.totalorder %v2312_v50, 512  ;;  %v2281_v20 = vadd.s32 160, %v3830_v17  ;;  %v2315_v26 = vadd.s32 %v4194_v30, %v2282_v13 }
 0x50f   : > { %v2290_v13 = vadd.s32 232, %v3830_v17 }
 0x510   : > { %2490 = vxpose.xlu0.c.b16.cont [5/8] %v2458_v23, 128  ;;  %v2314_v33 = vadd.s32 %v4194_v30, %v2281_v20  ;;  %vm2347_vm6 = vcmp.lt.s32.totalorder %v2315_v26, 512  ;;  %v2275_v26 = vadd.s32 112, %v3830_v17 }
 0x512   : > { %vm2346_vm5 = vcmp.lt.s32.totalorder %v2314_v33, 512  ;;  %v2323_v33 = vadd.s32 %v4194_v30, %v2290_v13 }
 0x514   : > { %2491 = vxpose.xlu0.c.b16.cont [6/8] %v2459_v37, 128  ;;  %vm2355_vm14 = vcmp.lt.s32.totalorder %v2323_v33, 512 }
 0x515   : > { %v3333_v59 = vpop.eup %3332 }
 0x516   : > { %v2221_v21 = vmul.f32 %v3333_v59, %v4112_v36  ;;  %v2278_v36 = vadd.s32 136, %v3830_v17 }
 0x517   : > { %v3335_v12 = vpop.eup %3334 }
 0x518   : > { %v2223_v31 = vmul.f32 %v3335_v12, %v4116_v38  ;;  %v2434_v41 = vsel %vm2338_vm15, %v2221_v21, 0.0  ;;  %v2311_v24 = vadd.s32 %v4194_v30, %v2278_v36  ;;  %v2316_v12 = vadd.s32 %v4194_v30, %v2283_v28 }
 0x519   : > { %v2169_v40 = vpop.xlane.xlu1 %2168  ;;  %v2276_v28 = vadd.s32 120, %v3830_v17 }
 0x51a   : > { %v2435_v46 = vsel %vm2339_vm0, %v2223_v31, 0.0  ;;  %vm2343_vm2 = vcmp.lt.s32.totalorder %v2311_v24, 512  ;;  %vm2348_vm8 = vcmp.lt.s32.totalorder %v2316_v12, 512  ;;  %v2308_v12 = vadd.s32 %v4194_v30, %v2275_v26 }
 0x51b   : > { %v2460_v2 = vpack.c.bf16 %v2435_v46, %v2434_v41 }
 0x51d   : > { %v2165_v47 = vpop.xlane.xlu1 %2164  ;;  %2492 = vxpose.xlu0.c.b16.cont [7/8] %v2460_v2, 128 }
 0x51e   : > { %v2171_v44 = vpop.xlane.xlu0 %2170  ;;  %3336 = vrcp.f32 %v2165_v47 }
 0x51f   : > { %3338 = vrcp.f32 %v2171_v44 }
 0x520   : > { %3340 = vrcp.f32 %v2169_v40 }
 0x522   : > { %v2167_v25 = vpop.xlane.xlu0 %2166 }
 0x523   : > { %3342 = vrcp.f32 %v2167_v25 }
 0x528   : > { %v3337_v51 = vpop.eup %3336 }
 0x529   : > { %v2177_v38 = vpop.xlane.xlu1 %2176  ;;  %v3339_v45 = vpop.eup %3338  ;;  %v2229_v39 = vmul.f32 %v3337_v51, %v4126_v61  ;;  %v2288_v51 = vadd.s32 216, %v3830_v17 }
 0x52a   : > { %v3341_v62 = vpop.eup %3340  ;;  %v2235_v48 = vmul.f32 %v3339_v45, %v4129_v1 }
 0x52b   : > { %v2179_v55 = vpop.xlane.xlu0 %2178  ;;  %v2438_v43 = vsel %vm2342_vm1, %v2229_v39, 0.0  ;;  %v2233_v61 = vmul.f32 %v3341_v62, %v4122_v53  ;;  %v2321_v45 = vadd.s32 %v4194_v30, %v2288_v51  ;;  %vm2340_vm1 = vcmp.lt.s32.totalorder %v2308_v12, 512 }
 0x52c   : > { %3344 = vrcp.f32 %v2179_v55  ;;  %v2441_v18 = vsel %vm2345_vm3, %v2235_v48, 0.0 }
 0x52d   : > { %v3343_v49 = vpop.eup %3342  ;;  %v2173_v6 = vpop.xlane.xlu1 %2172  ;;  %v2440_v23 = vsel %vm2344_vm4, %v2233_v61, 0.0  ;;  %vm2353_vm11 = vcmp.lt.s32.totalorder %v2321_v45, 512 }
 0x52e   : > { %3346 = vrcp.f32 %v2173_v6  ;;  %v2231_v3 = vmul.f32 %v3343_v49, %v4135_v27  ;;  %v2284_v27 = vadd.s32 184, %v3830_v17  ;;  %v2463_v1 = vpack.c.bf16 %v2441_v18, %v2440_v23 }
 0x52f   : > { %3348 = vrcp.f32 %v2177_v38  ;;  %v2175_v34 = vpop.xlane.xlu0 %2174  ;;  %v2320_v49 = vadd.s32 %v4194_v30, %v2287_v5 }
 0x530   : > { %3350 = vrcp.f32 %v2175_v34  ;;  %v2439_v7 = vsel %vm2343_vm2, %v2231_v3, 0.0  ;;  %v2317_v37 = vadd.s32 %v4194_v30, %v2284_v27  ;;  %v2291_v27 = vadd.s32 240, %v3830_v17 }
 0x531   : > { %v2462_v54 = vpack.c.bf16 %v2439_v7, %v2438_v43  ;;  %vm2352_vm12 = vcmp.lt.s32.totalorder %v2320_v49, 512 }
 0x532   : > { %vm2349_vm7 = vcmp.lt.s32.totalorder %v2317_v37, 512 }
 0x533   : > { %2502 = vxpose.xlu1.c.b16.start [1/8] %v2462_v54, 128 }
 0x536   : > { %v3345_v32 = vpop.eup %3344 }
 0x537   : > { %2503 = vxpose.xlu1.c.b16.cont [2/8] %v2463_v1, 128  ;;  %v2243_v41 = vmul.f32 %v3345_v32, %v4141_v56  ;;  %v2286_v56 = vadd.s32 200, %v3830_v17 }
 0x538   : > { %v3347_v53 = vpop.eup %3346 }
 0x539   : > { %v3349_v10 = vpop.eup %3348  ;;  %v2185_v63 = vpop.xlane.xlu1 %2184  ;;  %v2237_v59 = vmul.f32 %v3347_v53, %v4145_v57  ;;  %v2445_v52 = vsel %vm2349_vm7, %v2243_v41, 0.0 }
 0x53a   : > { %v3351_v21 = vpop.eup %3350  ;;  %v2241_v44 = vmul.f32 %v3349_v10, %v4138_v15  ;;  %v2319_v15 = vadd.s32 %v4194_v30, %v2286_v56 }
 0x53b   : > { %v2187_v31 = vpop.xlane.xlu0 %2186  ;;  %v2239_v40 = vmul.f32 %v3351_v21, %v4149_v35  ;;  %v2442_v2 = vsel %vm2346_vm5, %v2237_v59, 0.0  ;;  %v2285_v35 = vadd.s32 192, %v3830_v17  ;;  %v2324_v59 = vadd.s32 %v4194_v30, %v2291_v27 }
 0x53c   : > { %3352 = vrcp.f32 %v2187_v31  ;;  %v2444_v36 = vsel %vm2348_vm8, %v2241_v44, 0.0  ;;  %vm2351_vm10 = vcmp.lt.s32.totalorder %v2319_v15, 512  ;;  %v2309_v31 = vadd.s32 %v4194_v30, %v2276_v28 }
 0x53d   : > { %v2181_v46 = vpop.xlane.xlu1 %2180  ;;  %v2443_v47 = vsel %vm2347_vm6, %v2239_v40, 0.0  ;;  %v2465_v42 = vpack.c.bf16 %v2445_v52, %v2444_v36  ;;  %v2318_v38 = vadd.s32 %v4194_v30, %v2285_v35  ;;  %vm2356_vm0 = vcmp.lt.s32.totalorder %v2324_v59, 512 }
 0x53e   : > { %3354 = vrcp.f32 %v2181_v46  ;;  %v2464_v25 = vpack.c.bf16 %v2443_v47, %v2442_v2  ;;  %vm2341_vm2 = vcmp.lt.s32.totalorder %v2309_v31, 512 }
 0x53f   : > { %3356 = vrcp.f32 %v2185_v63  ;;  %v2183_v57 = vpop.xlane.xlu0 %2182  ;;  %vm2350_vm9 = vcmp.lt.s32.totalorder %v2318_v38, 512 }
 0x540   : > { %3358 = vrcp.f32 %v2183_v57  ;;  %2504 = vxpose.xlu1.c.b16.cont [3/8] %v2464_v25, 128 }
 0x544   : > { %2505 = vxpose.xlu1.c.b16.cont [4/8] %v2465_v42, 128 }
 0x546   : > { %v3353_v24 = vpop.eup %3352 }
 0x547   : > { %v2251_v3 = vmul.f32 %v3353_v24, %v4157_v11  ;;  %v2289_v11 = vadd.s32 224, %v3830_v17 }
 0x548   : > { %v3355_v4 = vpop.eup %3354 }
 0x549   : > { %v3357_v55 = vpop.eup %3356  ;;  %v2193_v58 = vpop.xlane.xlu1 %2192  ;;  %v2245_v62 = vmul.f32 %v3355_v4, %v4161_v16  ;;  %v2449_v54 = vsel %vm2353_vm11, %v2251_v3, 0.0  ;;  %v2322_v1 = vadd.s32 %v4194_v30, %v2289_v11 }
 0x54a   : > { %v3359_v39 = vpop.eup %3358  ;;  %v2249_v7 = vmul.f32 %v3357_v55, %v4154_v0  ;;  %v2292_v0 = vadd.s32 248, %v3830_v17 }
 0x54b   : > { %v2195_v6 = vpop.xlane.xlu0 %2194  ;;  %v2247_v50 = vmul.f32 %v3359_v39, %v4165_v19  ;;  %v2446_v34 = vsel %vm2350_vm9, %v2245_v62, 0.0  ;;  %vm2354_vm13 = vcmp.lt.s32.totalorder %v2322_v1, 512 }
 0x54c   : > { %3360 = vrcp.f32 %v2195_v6  ;;  %v2448_v20 = vsel %vm2352_vm12, %v2249_v7, 0.0  ;;  %v2325_v37 = vadd.s32 %v4194_v30, %v2292_v0 }
 0x54d   : > { %v2189_v48 = vpop.xlane.xlu1 %2188  ;;  %v2447_v43 = vsel %vm2351_vm10, %v2247_v50, 0.0  ;;  %v2467_v19 = vpack.c.bf16 %v2449_v54, %v2448_v20 }
 0x54e   : > { %3362 = vrcp.f32 %v2189_v48  ;;  %v2466_v61 = vpack.c.bf16 %v2447_v43, %v2446_v34  ;;  %vm2357_vm15 = vcmp.lt.s32.totalorder %v2325_v37, 512 }
 0x54f   : > { %3364 = vrcp.f32 %v2193_v58  ;;  %v2191_v16 = vpop.xlane.xlu0 %2190 }
 0x550   : > { %3366 = vrcp.f32 %v2191_v16  ;;  %2506 = vxpose.xlu1.c.b16.cont [5/8] %v2466_v61, 128 }
 0x551   : > { %v2161_v18 = vpop.xlane.xlu1 %2160 }
 0x552   : > { %3368 = vrcp.f32 %v2161_v18 }
 0x553   : > { %v2163_v23 = vpop.xlane.xlu0 %2162 }
 0x554   : > { %3370 = vrcp.f32 %v2163_v23  ;;  %2507 = vxpose.xlu1.c.b16.cont [6/8] %v2467_v19, 128 }
 0x556   : > { %v3361_v32 = vpop.eup %3360 }
 0x557   : > { %v2259_v17 = vmul.f32 %v3361_v32, %v4175_v29 }
 0x558   : > { %v3363_v53 = vpop.eup %3362 }
 0x559   : > { %v3365_v10 = vpop.eup %3364  ;;  %v2253_v63 = vmul.f32 %v3363_v53, %v4178_v9  ;;  %v2453_v57 = vsel %vm2357_vm15, %v2259_v17, 0.0 }
 0x55a   : > { %v3367_v21 = vpop.eup %3366  ;;  %v2257_v47 = vmul.f32 %v3365_v10, %v4172_v8 }
 0x55b   : > { %v2255_v40 = vmul.f32 %v3367_v21, %v4181_v60  ;;  %v2450_v46 = vsel %vm2354_vm13, %v2253_v63, 0.0 }
 0x55c   : > { %v3369_v41 = vpop.eup %3368  ;;  %v2452_v60 = vsel %vm2356_vm0, %v2257_v47, 0.0 }
 0x55d   : > { %v2451_v2 = vsel %vm2355_vm14, %v2255_v40, 0.0  ;;  %v2225_v9 = vmul.f32 %v3369_v41, %v4184_v22  ;;  %v2469_v36 = vpack.c.bf16 %v2453_v57, %v2452_v60 }
 0x55e   : > { %v3371_v44 = vpop.eup %3370  ;;  %v2468_v25 = vpack.c.bf16 %v2451_v2, %v2450_v46 }
 0x55f   : > { %v2227_v30 = vmul.f32 %v3371_v44, %v4187_v14  ;;  %v2436_v52 = vsel %vm2340_vm1, %v2225_v9, 0.0 }
 0x560   : > { %2508 = vxpose.xlu1.c.b16.cont [7/8] %v2468_v25, 128 }
 0x561   : > { %v2437_v29 = vsel %vm2341_vm2, %v2227_v30, 0.0 }
 0x562   : > { %v2461_v42 = vpack.c.bf16 %v2437_v29, %v2436_v52 }
 0x564   : > { %2509 = vxpose.xlu1.c.b16.end [8/8] %v2469_v36, 128  ;;  %2493 = vxpose.xlu0.c.b16.end [8/8] %v2461_v42, 128 }
 0x5ae   : > { %v2510_v35 = vpop.trf.xlu1  ;;  %v2494_v8 = vpop.trf.xlu0 }
 0x5af   : > { %2550 = vmatprep.mubr.bf16.mxu1 %v2510_v35 }
 0x5b0   : > { %2551 = vmatmul.mubr.bf16.vlgmr.msra.gmra.mrb[28].mxu1 %v2494_v8 }
 0x5b2   : > { %v2511_v22 = vpop.trf.xlu1  ;;  %v2495_v56 = vpop.trf.xlu0 }
 0x5b3   : > { %2558 = vmatprep.mubr.bf16.mxu1 %v2511_v22 }
 0x5b6   : > { %v2512_v51 = vpop.trf.xlu1  ;;  %v2496_v38 = vpop.trf.xlu0 }
 0x5b8   : > { %2559 = vmatmul.mubr.bf16.gmra.mrb[32].mxu1 %v2495_v56 }
 0x5b9   : > { %2566 = vmatprep.mubr.bf16.mxu1 %v2512_v51 }
 0x5ba   : > { %v2513_v14 = vpop.trf.xlu1  ;;  %v2497_v15 = vpop.trf.xlu0 }
 0x5be   : > { %v2514_v5 = vpop.trf.xlu1  ;;  %v2498_v24 = vpop.trf.xlu0 }
 0x5c0   : > { %2567 = vmatmul.mubr.bf16.gmra.mrb[36].mxu1 %v2496_v38 }
 0x5c1   : > { %2574 = vmatprep.mubr.bf16.mxu1 %v2513_v14 }
 0x5c2   : > { %v2515_v4 = vpop.trf.xlu1  ;;  %v2499_v45 = vpop.trf.xlu0 }
 0x5c6   : > { %v2516_v55 = vpop.trf.xlu1  ;;  %v2500_v58 = vpop.trf.xlu0 }
 0x5c8   : > { %2575 = vmatmul.mubr.bf16.gmra.mrb[40].mxu1 %v2497_v15 }
 0x5c9   : > { %2582 = vmatprep.mubr.bf16.mxu1 %v2514_v5 }
 0x5ca   : > { %v2517_v62 = vpop.trf.xlu1  ;;  %v2501_v39 = vpop.trf.xlu0 }
 0x5d0   : > { %2583 = vmatmul.mubr.bf16.gmra.mrb[44].mxu1 %v2498_v24 }
 0x5d1   : > { %2590 = vmatprep.mubr.bf16.mxu1 %v2515_v4 }
 0x5d8   : > { %2591 = vmatmul.mubr.bf16.gmra.mrb[48].mxu1 %v2499_v45 }
 0x5d9   : > { %2598 = vmatprep.mubr.bf16.mxu1 %v2516_v55 }
 0x5e0   : > { %2599 = vmatmul.mubr.bf16.gmra.mrb[52].mxu1 %v2500_v58 }
 0x5e1   : > { %2606 = vmatprep.mubr.bf16.mxu1 %v2517_v62 }
 0x5e8   : > { %2607 = vmatmul.mubr.bf16.gmra.mrb[56].mxu1 %v2501_v39 }
 0x683   : > { %v2982_v49 = vpop.f32.mrb[28].mxu1 }
 0x684   : > { %v2983_v6 = vpop.f32.mrb[29].mxu1 }
 0x685   : > { %v2984_v50 = vadd.f32 %v2983_v6, %v2982_v49  ;;  %v2985_v3 = vpop.f32.mrb[30].mxu1 }
 0x686   : > { %v2986_v48 = vpop.f32.mrb[31].mxu1 }
 0x687   : > { %2615 = vst [vmem:[%s3619_s8] sm:$0xff] %v2984_v50  ;;  %v2987_v34 = vadd.f32 %v2986_v48, %v2985_v3 }
 0x689   : > { %2616 = vst [vmem:[%s3619_s8 + $0x8] sm:$0xff] %v2987_v34 }
 0x68b   : > { %v2988_v43 = vpop.f32.mrb[32].mxu1 }
 0x68c   : > { %v2989_v7 = vpop.f32.mrb[33].mxu1 }
 0x68d   : > { %v2990_v61 = vadd.f32 %v2989_v7, %v2988_v43  ;;  %v2991_v16 = vpop.f32.mrb[34].mxu1 }
 0x68e   : > { %v2992_v54 = vpop.f32.mrb[35].mxu1 }
 0x68f   : > { %2617 = vst [vmem:[%s3619_s8 + $0x10] sm:$0xff] %v2990_v61  ;;  %v2993_v18 = vadd.f32 %v2992_v54, %v2991_v16 }
 0x691   : > { %2618 = vst [vmem:[%s3619_s8 + $0x18] sm:$0xff] %v2993_v18 }
 0x693   : > { %v2994_v20 = vpop.f32.mrb[36].mxu1 }
 0x694   : > { %v2995_v19 = vpop.f32.mrb[37].mxu1 }
 0x695   : > { %v2996_v11 = vadd.f32 %v2995_v19, %v2994_v20  ;;  %v2997_v13 = vpop.f32.mrb[38].mxu1 }
 0x696   : > { %v2998_v23 = vpop.f32.mrb[39].mxu1 }
 0x697   : > { %2619 = vst [vmem:[%s3619_s8 + $0x20] sm:$0xff] %v2996_v11  ;;  %v2999_v0 = vadd.f32 %v2998_v23, %v2997_v13 }
 0x699   : > { %2620 = vst [vmem:[%s3619_s8 + $0x28] sm:$0xff] %v2999_v0 }
 0x69b   : > { %v3000_v27 = vpop.f32.mrb[40].mxu1 }
 0x69c   : > { %v3001_v1 = vpop.f32.mrb[41].mxu1 }
 0x69d   : > { %v3002_v33 = vadd.f32 %v3001_v1, %v3000_v27  ;;  %v3003_v26 = vpop.f32.mrb[42].mxu1 }
 0x69e   : > { %v3004_v28 = vpop.f32.mrb[43].mxu1 }
 0x69f   : > { %2621 = vst [vmem:[%s3619_s8 + $0x30] sm:$0xff] %v3002_v33  ;;  %v3005_v32 = vadd.f32 %v3004_v28, %v3003_v26 }
 0x6a1   : > { %2622 = vst [vmem:[%s3619_s8 + $0x38] sm:$0xff] %v3005_v32 }
 0x6a3   : > { %v3006_v53 = vpop.f32.mrb[44].mxu1 }
 0x6a4   : > { %v3007_v37 = vpop.f32.mrb[45].mxu1 }
 0x6a5   : > { %v3008_v10 = vadd.f32 %v3007_v37, %v3006_v53  ;;  %v3009_v63 = vpop.f32.mrb[46].mxu1 }
 0x6a6   : > { %v3010_v59 = vpop.f32.mrb[47].mxu1 }
 0x6a7   : > { %2623 = vst [vmem:[%s3619_s8 + $0x40] sm:$0xff] %v3008_v10  ;;  %v3011_v21 = vadd.f32 %v3010_v59, %v3009_v63 }
 0x6a9   : > { %2624 = vst [vmem:[%s3619_s8 + $0x48] sm:$0xff] %v3011_v21 }
 0x6ab   : > { %v3012_v12 = vpop.f32.mrb[48].mxu1 }
 0x6ac   : > { %v3013_v31 = vpop.f32.mrb[49].mxu1 }
 0x6ad   : > { %v3014_v40 = vadd.f32 %v3013_v31, %v3012_v12  ;;  %v3015_v17 = vpop.f32.mrb[50].mxu1 }
 0x6ae   : > { %v3016_v41 = vpop.f32.mrb[51].mxu1 }
 0x6af   : > { %2625 = vst [vmem:[%s3619_s8 + $0x50] sm:$0xff] %v3014_v40  ;;  %v3017_v46 = vadd.f32 %v3016_v41, %v3015_v17 }
 0x6b1   : > { %2626 = vst [vmem:[%s3619_s8 + $0x58] sm:$0xff] %v3017_v46 }
 0x6b3   : > { %v3018_v2 = vpop.f32.mrb[52].mxu1 }
 0x6b4   : > { %v3019_v47 = vpop.f32.mrb[53].mxu1 }
 0x6b5   : > { %v3020_v9 = vadd.f32 %v3019_v47, %v3018_v2  ;;  %v3021_v44 = vpop.f32.mrb[54].mxu1 }
 0x6b6   : > { %v3022_v25 = vpop.f32.mrb[55].mxu1 }
 0x6b7   : > { %2627 = vst [vmem:[%s3619_s8 + $0x60] sm:$0xff] %v3020_v9  ;;  %v3023_v57 = vadd.f32 %v3022_v25, %v3021_v44 }
 0x6b9   : > { %2628 = vst [vmem:[%s3619_s8 + $0x68] sm:$0xff] %v3023_v57 }
 0x6bb   : > { %v3024_v30 = vpop.f32.mrb[56].mxu1 }
 0x6bc   : > { %v3025_v60 = vpop.f32.mrb[57].mxu1 }
 0x6bd   : > { %v3026_v52 = vadd.f32 %v3025_v60, %v3024_v30  ;;  %v3027_v29 = vpop.f32.mrb[58].mxu1 }
 0x6be   : > { %v3028_v36 = vpop.f32.mrb[59].mxu1 }
 0x6bf   : > { %2629 = vst [vmem:[%s3619_s8 + $0x70] sm:$0xff] %v3026_v52  ;;  %v3029_v42 = vadd.f32 %v3028_v36, %v3027_v29 }
 0x6c1   : > { %2630 = vst [vmem:[%s3619_s8 + $0x78] sm:$0xff] %v3029_v42 }
 0x6c2 PF: > { %s17_s30 = sadd.s32 1, %s3426_s30   ;;  %s4341_s17 = sld [smem:[#allocation4_spill]] }
 0x6c3   : > { %p14_p1 = scmp.ge.s32.totalorder %s17_s30, 6   ;;  %s4342_s18 = sld [smem:[#allocation5_spill]] }
 0x6c4   : > { %s4343_s24 = smov %s3406_s25  ;;  %s4344_s25 = smov %s3521_s14 }
 0x6c5   : > { %s4345_s26 = smov %s3418_s28  ;;  %s4346_s27 = smov %s3422_s29 }
 0x6c6   :  { %16 = sbr.rel (!%p14_p1) target bundleno = 6 (0x6), region = 135 }
 0x6c8   : > { %s4347_s28 = smov %s4341_s17 }
 0x6c9   : > { %s4348_s29 = smov %s4342_s18 }

</bundles_post_ra>
